<compile_context>
chip_gen: v7x
topology: tpu7x:2x2x1
jax: 0.10.0
libtpu: 0.0.40
codegen_flags: <defaults>
</compile_context>

<pallas_src>
import jax
import jax.numpy as jnp
from jax import lax
from jax.experimental import pallas as pl
from jax.experimental.pallas import tpu as pltpu


def _round_up(x, m):
    return (x + m - 1) // m * m


# Number of independent batch sub-tiles interleaved per time step.
_N_SUB = 2

# Padded gate-block order inside the kernel is (i, f, o, g): one sigmoid covers
# the first 3*Hp lanes, one tanh the last Hp.  PyTorch / make_params order is
# (i, f, g, o); dest block k takes source gate _GATE_SRC[k].
_GATE_SRC = (0, 1, 3, 2)


def lstm_chunk_kernel(len_ref, x_ref, wih_ref, whh_ref, b_ref,
                      wout_ref, bout_ref, out_ref, h_sc, c_sc, pre_sc):
    """Grid = (batch_tiles, time_chunks); time axis innermost / "arbitrary".

    len_ref : [BB, 1]        int32  valid lengths for this batch tile
    x_ref   : [TC, BB, E]    bf16   embedded inputs (streamed per time chunk)
    wih_ref : [E, 4*Hp]      bf16   input->gates  (gate order i,f,o,g; lane pad)
    whh_ref : [Hp, 4*Hp]     bf16   hidden->gates
    b_ref   : [1, 4*Hp]      f32    combined bias (b_ih + b_hh)
    wout_ref: [Hp, Cp]       bf16   classifier weights
    bout_ref: [1, Cp]        f32
    out_ref : [BB, Cp]       f32    logits (lane padded)
    h_sc/c_sc: [BB, Hp]      f32    persistent hidden / cell state
    pre_sc  : [TC, BB, 4*Hp] f32    hoisted input projection for this chunk
    """
    TC, BB, E = x_ref.shape
    Hp = h_sc.shape[1]
    BBs = BB // _N_SUB
    j = pl.program_id(1)

    @pl.when(j == 0)
    def _init():
        h_sc[...] = jnp.zeros_like(h_sc)
        c_sc[...] = jnp.zeros_like(c_sc)

    # Hoisted input projection: ONE chunk-sized bf16 MXU matmul (f32 accumulate)
    # with the bias folded in, parked in VMEM so the unrolled time loop only
    # keeps per-step values live in vregs.
    x2 = x_ref[...].reshape(TC * BB, E)
    pre = (jnp.dot(x2, wih_ref[...], preferred_element_type=jnp.float32)
           + b_ref[...])                                       # [TC*BB, 4*Hp]
    pre_sc[...] = pre.reshape(TC, BB, 4 * Hp)

    whh = whh_ref[...]                                         # bf16 [Hp, 4Hp]
    t0 = j * TC
    # Hoisted mask operand: remaining length per row; per-step work is a single
    # tiny compare against the loop counter.
    rem = len_ref[...] - t0                                    # [BB, 1] int32
    rems = tuple(rem[k * BBs:(k + 1) * BBs] for k in range(_N_SUB))

    # Two independent batch sub-tiles (separate h/c chains): the scheduler can
    # overlap sub-tile B's h@W_hh push with sub-tile A's MXU drain / VPU+EUP.
    hs = tuple(h_sc[k * BBs:(k + 1) * BBs, :] for k in range(_N_SUB))
    cs = tuple(c_sc[k * BBs:(k + 1) * BBs, :] for k in range(_N_SUB))

    def step(t, carry):
        hs_c, cs_c = carry
        pre_t = pre_sc[t]                                      # [BB, 4*Hp] f32
        new_h, new_c = [], []
        for k in range(_N_SUB):
            h_k, c_k = hs_c[k], cs_c[k]
            gates = (pre_t[k * BBs:(k + 1) * BBs, :]
                     + jnp.dot(h_k.astype(jnp.bfloat16), whh,
                               preferred_element_type=jnp.float32))
            sig = jax.nn.sigmoid(gates[:, :3 * Hp])            # i | f | o
            i_g = sig[:, 0 * Hp:1 * Hp]
            f_g = sig[:, 1 * Hp:2 * Hp]
            o_g = sig[:, 2 * Hp:3 * Hp]
            g_g = jnp.tanh(gates[:, 3 * Hp:4 * Hp])
            c_new = f_g * c_k + i_g * g_g
            h_new = o_g * jnp.tanh(c_new)
            # pack_padded_sequence equivalence: freeze (h, c) once t >= length.
            keep = t < rems[k]                                 # [BBs, 1] bool
            new_h.append(jnp.where(keep, h_new, h_k))
            new_c.append(jnp.where(keep, c_new, c_k))
        return tuple(new_h), tuple(new_c)

    hs, cs = lax.fori_loop(0, TC, step, (hs, cs), unroll=True)

    for k in range(_N_SUB):
        h_sc[k * BBs:(k + 1) * BBs, :] = hs[k]
        c_sc[k * BBs:(k + 1) * BBs, :] = cs[k]

    @pl.when(j == pl.num_programs(1) - 1)
    def _finalize():
        h_last = h_sc[...].astype(jnp.bfloat16)
        out_ref[...] = (jnp.dot(h_last, wout_ref[...],
                                preferred_element_type=jnp.float32)
                        + bout_ref[...]).astype(out_ref.dtype)


def make_params(key, num_embeddings, embedding_dim, hidden_dim, num_class):
    ks = jax.random.split(key, 7)
    scale = 0.1
    emb = scale * jax.random.normal(ks[0], (num_embeddings, embedding_dim),
                                    jnp.float32)
    emb = emb.at[0].set(0.0)  # padding_idx=0
    w_ih = scale * jax.random.normal(ks[1], (embedding_dim, 4 * hidden_dim),
                                     jnp.float32)
    w_hh = scale * jax.random.normal(ks[2], (hidden_dim, 4 * hidden_dim),
                                     jnp.float32)
    b_ih = scale * jax.random.normal(ks[3], (4 * hidden_dim,), jnp.float32)
    b_hh = scale * jax.random.normal(ks[4], (4 * hidden_dim,), jnp.float32)
    w_out = scale * jax.random.normal(ks[5], (hidden_dim, num_class),
                                      jnp.float32)
    b_out = scale * jax.random.normal(ks[6], (num_class,), jnp.float32)
    return {
        "embedding": emb,
        "w_ih": w_ih,                                    # [E, 4H] (i,f,g,o)
        "w_hh": w_hh,                                    # [H, 4H]
        "b": (b_ih + b_hh).reshape(1, 4 * hidden_dim),   # [1, 4H]
        "w_out": w_out,                                  # [H, C]
        "b_out": b_out.reshape(1, num_class),            # [1, C]
    }


def _pad_gates_lastdim(w, H, Hp):
    """[rows, 4H] (PyTorch gate order i,f,g,o) -> [rows, 4Hp] in kernel gate
    order (i,f,o,g), each block zero-padded from H to Hp lanes.  Zero padding
    is exact: padded hidden units get zero pre-activations, so g=tanh(0)=0 and
    the padded c/h lanes stay 0 forever."""
    rows = w.shape[0]
    out = jnp.zeros((rows, 4 * Hp), w.dtype)
    for k, src in enumerate(_GATE_SRC):
        out = out.at[:, k * Hp:k * Hp + H].set(w[:, src * H:(src + 1) * H])
    return out


def pad_params_for_kernel(params, Hp, Cp):
    H = params["w_hh"].shape[0]
    C = params["w_out"].shape[1]
    w_ih = _pad_gates_lastdim(params["w_ih"], H, Hp).astype(jnp.bfloat16)
    w_hh = _pad_gates_lastdim(params["w_hh"], H, Hp)
    w_hh = jnp.pad(w_hh, ((0, Hp - H), (0, 0))).astype(jnp.bfloat16)
    b = _pad_gates_lastdim(params["b"], H, Hp)                        # f32
    w_out = jnp.pad(params["w_out"],
                    ((0, Hp - H), (0, Cp - C))).astype(jnp.bfloat16)  # bf16
    b_out = jnp.pad(params["b_out"], ((0, 0), (0, Cp - C)))           # f32
    return w_ih, w_hh, b, w_out, b_out


def _vmem_bytes_estimate(TC, BB, E, Hp, Cp):
    lane = lambda n: _round_up(n, 128)
    x_blk = 2 * TC * BB * lane(E) * 2                 # bf16 x chunk, 2 buffers
    pre = TC * BB * 4 * Hp * 4                        # f32 projection scratch
    wts = 2 * (lane(E) * 4 * Hp + Hp * 4 * Hp + Hp * Cp) * 2   # bf16, 2 buffers
    state = 2 * BB * Hp * 4                           # h/c scratch
    outb = 2 * BB * Cp * 4                            # logits block, 2 buffers
    misc = (8 * 4 * Hp + 8 * Cp + BB * 128) * 4       # biases, lengths, slack
    return x_blk + pre + wts + state + outb + misc


def lstm_main_intent_forward(tokens, lengths, params, *, t_chunk=16,
                             block_b=256, min_batch_tiles=1):
    """tokens: int32 [B, T]; lengths: int32 [B] -> logits f32 [B, num_class].

    On v7x pass min_batch_tiles=2 so the leading "parallel" batch axis spans
    both TensorCores (the time axis is inherently sequential).
    """
    emb = params["embedding"]
    B, T = tokens.shape
    E = emb.shape[1]
    H = params["w_hh"].shape[0]
    C = params["w_out"].shape[1]

    # TPU-friendly padded sizes.
    Hp = _round_up(H, 128)                  # lane-aligned hidden / gate blocks
    Cp = _round_up(C, 128)                  # lane-dense output store
    # bf16 activations: keep the sublane (second-to-last) block dim a multiple
    # of 16; _N_SUB=2 also needs BB divisible by 16.
    BB = max(16, min(_round_up(B, 16), _round_up(block_b, 16)))
    Bp = _round_up(max(B, min_batch_tiles * BB), BB)
    TC = max(1, min(t_chunk, T))

    # VMEM budgeting (v7x has 64 MiB physical / 32 MiB scoped default): shrink
    # the time chunk until the working set fits, then raise the scoped limit.
    budget = 48 * 1024 * 1024
    while TC > 1 and _vmem_bytes_estimate(TC, BB, E, Hp, Cp) > budget:
        TC = max(1, TC // 2)
    Tp = _round_up(T, TC)
    est = _vmem_bytes_estimate(TC, BB, E, Hp, Cp)
    vmem_limit = int(min(budget, max(32 * 1024 * 1024, 1.25 * est)))

    # Embedding lookup (padding_idx handled by the zero row) directly in
    # time-major order -- no [B,T,E] materialization + transpose.  Dropout is
    # identity at inference.  Operands cast to bf16 for the MXU.
    x_tm = jnp.take(emb.astype(jnp.bfloat16), tokens.T.astype(jnp.int32),
                    axis=0)                                     # [T, B, E]
    x_tm = jnp.pad(x_tm, ((0, Tp - T), (0, Bp - B), (0, 0)))    # [Tp, Bp, E]

    # Padded batch rows get length 0 -> their state stays frozen at zero.
    lens2d = jnp.pad(lengths.astype(jnp.int32), (0, Bp - B)).reshape(Bp, 1)

    w_ih, w_hh, b, w_out, b_out = pad_params_for_kernel(params, Hp, Cp)

    b_tiles = Bp // BB
    n_chunks = Tp // TC

    out_padded = pl.pallas_call(
        lstm_chunk_kernel,
        out_shape=jax.ShapeDtypeStruct((Bp, Cp), jnp.float32),
        grid=(b_tiles, n_chunks),
        in_specs=[
            pl.BlockSpec((BB, 1), lambda i, j: (i, 0)),            # lengths
            pl.BlockSpec((TC, BB, E), lambda i, j: (j, i, 0)),     # x, streamed
            pl.BlockSpec((E, 4 * Hp), lambda i, j: (0, 0)),        # w_ih
            pl.BlockSpec((Hp, 4 * Hp), lambda i, j: (0, 0)),       # w_hh
            pl.BlockSpec((1, 4 * Hp), lambda i, j: (0, 0)),        # bias
            pl.BlockSpec((Hp, Cp), lambda i, j: (0, 0)),           # w_out
            pl.BlockSpec((1, Cp), lambda i, j: (0, 0)),            # b_out
        ],
        out_specs=pl.BlockSpec((BB, Cp), lambda i, j: (i, 0)),
        scratch_shapes=[pltpu.VMEM((BB, Hp), jnp.float32),         # h state
                        pltpu.VMEM((BB, Hp), jnp.float32),         # c state
                        pltpu.VMEM((TC, BB, 4 * Hp), jnp.float32)],  # pre
        compiler_params=pltpu.CompilerParams(
            dimension_semantics=("parallel", "arbitrary"),
            vmem_limit_bytes=vmem_limit),
    )(lens2d, x_tm, w_ih, w_hh, b, w_out, b_out)

    return out_padded[:B, :C]


def reference_forward(tokens, lengths, params):
    """Pure-JAX f32 reference mirroring PyTorch packed-LSTM semantics."""
    x = jnp.take(params["embedding"], tokens, axis=0)
    B, T, _ = x.shape
    H = params["w_hh"].shape[0]
    h = jnp.zeros((B, H), jnp.float32)
    c = jnp.zeros((B, H), jnp.float32)
    for t in range(T):
        gates = x[:, t] @ params["w_ih"] + h @ params["w_hh"] + params["b"]
        i = jax.nn.sigmoid(gates[:, 0 * H:1 * H])
        f = jax.nn.sigmoid(gates[:, 1 * H:2 * H])
        g = jnp.tanh(gates[:, 2 * H:3 * H])
        o = jax.nn.sigmoid(gates[:, 3 * H:4 * H])
        c_new = f * c + i * g
        h_new = o * jnp.tanh(c_new)
        m = (t < lengths)[:, None]
        h = jnp.where(m, h_new, h)
        c = jnp.where(m, c_new, c)
    return h @ params["w_out"] + params["b_out"]


if __name__ == "__main__":
    NUM_EMBEDDINGS = 50   # vocab
    EMBEDDING_DIM = 32
    HIDDEN_DIM = 32
    NUM_CLASS = 8

    key = jax.random.PRNGKey(0)
    k_tok1, k_tok2, k_len2, k_par = jax.random.split(key, 4)
    params = make_params(k_par, NUM_EMBEDDINGS, EMBEDDING_DIM, HIDDEN_DIM,
                         NUM_CLASS)

    # Test 1: module-sized shapes (B=2, T=8); t_chunk=4 -> 2 time chunks,
    # exercising the cross-chunk h/c carry and the pl.when init/finalize paths.
    B1, T1 = 2, 8
    lens1 = jnp.array([8, 5], dtype=jnp.int32)
    tok1 = jax.random.randint(k_tok1, (B1, T1), 1, NUM_EMBEDDINGS,
                              dtype=jnp.int32)
    pos1 = jnp.arange(T1, dtype=jnp.int32)[None, :]
    tok1 = jnp.where(pos1 < lens1[:, None], tok1, 0)   # padding_idx=0

    out1 = jax.block_until_ready(
        lstm_main_intent_forward(tok1, lens1, params, t_chunk=4))
    ref1 = reference_forward(tok1, lens1, params)
    assert out1.shape == (B1, NUM_CLASS)
    # bf16 matmul operands (f32 accumulation) vs the pure-f32 reference.
    assert jnp.allclose(out1, ref1, atol=2e-2, rtol=2e-2), (out1, ref1)

    # Test 2: two batch tiles (block_b=16, B=32), ragged lengths, two time
    # chunks with padding (T=12, TC=8) -> exercises batch tiling, sub-tile
    # interleave and masked padded timesteps.
    B2, T2 = 32, 12
    lens2 = jax.random.randint(k_len2, (B2,), 1, T2 + 1, dtype=jnp.int32)
    tok2 = jax.random.randint(k_tok2, (B2, T2), 1, NUM_EMBEDDINGS,
                              dtype=jnp.int32)
    pos2 = jnp.arange(T2, dtype=jnp.int32)[None, :]
    tok2 = jnp.where(pos2 < lens2[:, None], tok2, 0)

    out2 = jax.block_until_ready(
        lstm_main_intent_forward(tok2, lens2, params, t_chunk=8, block_b=16))
    ref2 = reference_forward(tok2, lens2, params)
    assert out2.shape == (B2, NUM_CLASS)
    assert jnp.allclose(out2, ref2, atol=2e-2, rtol=2e-2), (out2, ref2)

    print("KERNEL_OK")
</pallas_src>

<mosaic_0001>
module attributes {stable_mosaic.version = 11 : i64} {
  func.func @lstm_chunk_kernel(%arg0: i32, %arg1: i32, %arg2: memref<16x1xi32, #tpu.memory_space<vmem>>, %arg3: memref<4x16x32xbf16, #tpu.memory_space<vmem>>, %arg4: memref<32x512xbf16, #tpu.memory_space<vmem>>, %arg5: memref<128x512xbf16, #tpu.memory_space<vmem>>, %arg6: memref<1x512xf32, #tpu.memory_space<vmem>>, %arg7: memref<128x128xbf16, #tpu.memory_space<vmem>>, %arg8: memref<1x128xf32, #tpu.memory_space<vmem>>, %arg9: memref<16x128xf32, #tpu.memory_space<vmem>>, %arg10: memref<16x128xf32, #tpu.memory_space<vmem>>, %arg11: memref<16x128xf32, #tpu.memory_space<vmem>>, %arg12: memref<4x16x512xf32, #tpu.memory_space<vmem>>) attributes {dimension_semantics = [#tpu.dimension_semantics<parallel>, #tpu.dimension_semantics<arbitrary>], iteration_bounds = array<i64: 1, 2>, scalar_prefetch = 0 : i64, scratch_operands = 3 : i64, tpu.core_type = #tpu.core_type<tc>, window_params = [{transform_indices = @transform_0, window_bounds = array<i64: 16, 1>}, {transform_indices = @transform_1, window_bounds = array<i64: 4, 16, 32>}, {pipeline_mode = #tpu.pipeline_mode<synchronous>, transform_indices = @transform_2, window_bounds = array<i64: 32, 512>}, {pipeline_mode = #tpu.pipeline_mode<synchronous>, transform_indices = @transform_3, window_bounds = array<i64: 128, 512>}, {pipeline_mode = #tpu.pipeline_mode<synchronous>, transform_indices = @transform_4, window_bounds = array<i64: 1, 512>}, {pipeline_mode = #tpu.pipeline_mode<synchronous>, transform_indices = @transform_5, window_bounds = array<i64: 128, 128>}, {pipeline_mode = #tpu.pipeline_mode<synchronous>, transform_indices = @transform_6, window_bounds = array<i64: 1, 128>}, {transform_indices = @transform_7, window_bounds = array<i64: 16, 128>}]} {
    %c0_i32 = arith.constant 0 : i32
    %0 = arith.cmpi eq, %arg1, %c0_i32 : i32
    %1 = arith.extui %0 : i1 to i32
    %c0_i32_0 = arith.constant 0 : i32
    %2 = arith.cmpi ne, %1, %c0_i32_0 : i32
    scf.if %2 {
      %cst_57 = arith.constant 0.000000e+00 : f32
      %266 = vector.broadcast %cst_57 : f32 to vector<16x128xf32>
      %c0_58 = arith.constant 0 : index
      %c0_59 = arith.constant 0 : index
      %267 = vector.load %arg10[%c0_58, %c0_59] : memref<16x128xf32, #tpu.memory_space<vmem>>, vector<16x128xf32>
      tpu.vector_store %arg10[%c0_58, %c0_59], %266 {strides = array<i32>} : memref<16x128xf32, #tpu.memory_space<vmem>>, vector<16x128xf32>,
      %cst_60 = arith.constant 0.000000e+00 : f32
      %268 = vector.broadcast %cst_60 : f32 to vector<16x128xf32>
      %c0_61 = arith.constant 0 : index
      %c0_62 = arith.constant 0 : index
      %269 = vector.load %arg11[%c0_61, %c0_62] : memref<16x128xf32, #tpu.memory_space<vmem>>, vector<16x128xf32>
      tpu.vector_store %arg11[%c0_61, %c0_62], %268 {strides = array<i32>} : memref<16x128xf32, #tpu.memory_space<vmem>>, vector<16x128xf32>,
    } else {
    }
    %c0 = arith.constant 0 : index
    %c0_1 = arith.constant 0 : index
    %c0_2 = arith.constant 0 : index
    %3 = vector.load %arg3[%c0, %c0_1, %c0_2] : memref<4x16x32xbf16, #tpu.memory_space<vmem>>, vector<4x16x32xbf16>
    %4 = vector.shape_cast %3 : vector<4x16x32xbf16> to vector<64x32xbf16>
    %c0_3 = arith.constant 0 : index
    %c0_4 = arith.constant 0 : index
    %5 = vector.load %arg4[%c0_3, %c0_4] : memref<32x512xbf16, #tpu.memory_space<vmem>>, vector<32x512xbf16>
    %cst = arith.constant dense<0.000000e+00> : vector<64x512xf32>
    %6 = tpu.matmul %4, %5, %cst {dimension_numbers = #tpu.dot_dimension_numbers<[1], [0], [0], [1], [0, 0, 1, 1], [], []>} : vector<64x32xbf16>, vector<32x512xbf16>, vector<64x512xf32> -> vector<64x512xf32>
    %c0_5 = arith.constant 0 : index
    %c0_6 = arith.constant 0 : index
    %7 = vector.load %arg6[%c0_5, %c0_6] : memref<1x512xf32, #tpu.memory_space<vmem>>, vector<1x512xf32>
    %8 = vector.broadcast %7 : vector<1x512xf32> to vector<64x512xf32>
    %9 = arith.addf %6, %8 : vector<64x512xf32>
    %10 = vector.shape_cast %9 : vector<64x512xf32> to vector<4x16x512xf32>
    %c0_7 = arith.constant 0 : index
    %c0_8 = arith.constant 0 : index
    %c0_9 = arith.constant 0 : index
    %11 = vector.load %arg12[%c0_7, %c0_8, %c0_9] : memref<4x16x512xf32, #tpu.memory_space<vmem>>, vector<4x16x512xf32>
    tpu.vector_store %arg12[%c0_7, %c0_8, %c0_9], %10 {strides = array<i32>} : memref<4x16x512xf32, #tpu.memory_space<vmem>>, vector<4x16x512xf32>,
    %c0_10 = arith.constant 0 : index
    %c0_11 = arith.constant 0 : index
    %12 = vector.load %arg5[%c0_10, %c0_11] : memref<128x512xbf16, #tpu.memory_space<vmem>>, vector<128x512xbf16>
    %c4_i32 = arith.constant 4 : i32
    %13 = arith.muli %arg1, %c4_i32 : i32
    %c0_12 = arith.constant 0 : index
    %c0_13 = arith.constant 0 : index
    %14 = vector.load %arg2[%c0_12, %c0_13] : memref<16x1xi32, #tpu.memory_space<vmem>>, vector<16x1xi32>
    %15 = vector.broadcast %13 : i32 to vector<16x1xi32>
    %16 = arith.subi %14, %15 : vector<16x1xi32>
    %17 = vector.extract_strided_slice %16 {offsets = [0, 0], sizes = [8, 1], strides = [1, 1]} : vector<16x1xi32> to vector<8x1xi32>
    %18 = vector.extract_strided_slice %16 {offsets = [8, 0], sizes = [8, 1], strides = [1, 1]} : vector<16x1xi32> to vector<8x1xi32>
    %c0_14 = arith.constant 0 : index
    %c0_15 = arith.constant 0 : index
    %19 = vector.load %arg10[%c0_14, %c0_15] : memref<16x128xf32, #tpu.memory_space<vmem>>, vector<8x128xf32>
    %c8 = arith.constant 8 : index
    %c0_16 = arith.constant 0 : index
    %20 = vector.load %arg10[%c8, %c0_16] : memref<16x128xf32, #tpu.memory_space<vmem>>, vector<8x128xf32>
    %c0_17 = arith.constant 0 : index
    %c0_18 = arith.constant 0 : index
    %21 = vector.load %arg11[%c0_17, %c0_18] : memref<16x128xf32, #tpu.memory_space<vmem>>, vector<8x128xf32>
    %c8_19 = arith.constant 8 : index
    %c0_20 = arith.constant 0 : index
    %22 = vector.load %arg11[%c8_19, %c0_20] : memref<16x128xf32, #tpu.memory_space<vmem>>, vector<8x128xf32>
    %c0_i32_21 = arith.constant 0 : i32
    %23 = arith.index_cast %c0_i32_21 : i32 to index
    %c0_22 = arith.constant 0 : index
    %c0_23 = arith.constant 0 : index
    %24 = vector.load %arg12[%23, %c0_22, %c0_23] : memref<4x16x512xf32, #tpu.memory_space<vmem>>, vector<1x16x512xf32>
    %25 = vector.shape_cast %24 : vector<1x16x512xf32> to vector<16x512xf32>
    %26 = vector.extract_strided_slice %25 {offsets = [0, 0], sizes = [8, 512], strides = [1, 1]} : vector<16x512xf32> to vector<8x512xf32>
    %27 = arith.truncf %19 : vector<8x128xf32> to vector<8x128xbf16>
    %cst_24 = arith.constant dense<0.000000e+00> : vector<8x512xf32>
    %28 = tpu.matmul %27, %12, %cst_24 {dimension_numbers = #tpu.dot_dimension_numbers<[1], [0], [0], [1], [0, 0, 1, 1], [], []>} : vector<8x128xbf16>, vector<128x512xbf16>, vector<8x512xf32> -> vector<8x512xf32>
    %29 = arith.addf %26, %28 : vector<8x512xf32>
    %30 = vector.extract_strided_slice %29 {offsets = [0, 0], sizes = [8, 384], strides = [1, 1]} : vector<8x512xf32> to vector<8x384xf32>
    %31 = arith.negf %30 : vector<8x384xf32>
    %32 = math.exp %31 : vector<8x384xf32>
    %cst_25 = arith.constant 1.000000e+00 : f32
    %33 = vector.broadcast %cst_25 : f32 to vector<8x384xf32>
    %34 = arith.addf %33, %32 : vector<8x384xf32>
    %35 = arith.divf %33, %34 : vector<8x384xf32>
    %36 = vector.extract_strided_slice %35 {offsets = [0, 0], sizes = [8, 128], strides = [1, 1]} : vector<8x384xf32> to vector<8x128xf32>
    %37 = vector.extract_strided_slice %35 {offsets = [0, 128], sizes = [8, 128], strides = [1, 1]} : vector<8x384xf32> to vector<8x128xf32>
    %38 = vector.extract_strided_slice %35 {offsets = [0, 256], sizes = [8, 128], strides = [1, 1]} : vector<8x384xf32> to vector<8x128xf32>
    %39 = vector.extract_strided_slice %29 {offsets = [0, 384], sizes = [8, 128], strides = [1, 1]} : vector<8x512xf32> to vector<8x128xf32>
    %40 = math.tanh %39 : vector<8x128xf32>
    %41 = arith.mulf %37, %21 : vector<8x128xf32>
    %42 = arith.mulf %36, %40 : vector<8x128xf32>
    %43 = arith.addf %41, %42 : vector<8x128xf32>
    %44 = math.tanh %43 : vector<8x128xf32>
    %45 = arith.mulf %38, %44 : vector<8x128xf32>
    %46 = vector.broadcast %c0_i32_21 : i32 to vector<8x1xi32>
    %47 = arith.cmpi slt, %46, %17 : vector<8x1xi32>
    %48 = vector.shape_cast %47 : vector<8x1xi1> to vector<8x1xi1>
    %49 = vector.broadcast %48 : vector<8x1xi1> to vector<8x128xi1>
    %50 = arith.select %49, %45, %19 : vector<8x128xi1>, vector<8x128xf32>
    %51 = vector.shape_cast %47 : vector<8x1xi1> to vector<8x1xi1>
    %52 = vector.broadcast %51 : vector<8x1xi1> to vector<8x128xi1>
    %53 = arith.select %52, %43, %21 : vector<8x128xi1>, vector<8x128xf32>
    %54 = vector.extract_strided_slice %25 {offsets = [8, 0], sizes = [8, 512], strides = [1, 1]} : vector<16x512xf32> to vector<8x512xf32>
    %55 = arith.truncf %20 : vector<8x128xf32> to vector<8x128xbf16>
    %cst_26 = arith.constant dense<0.000000e+00> : vector<8x512xf32>
    %56 = tpu.matmul %55, %12, %cst_26 {dimension_numbers = #tpu.dot_dimension_numbers<[1], [0], [0], [1], [0, 0, 1, 1], [], []>} : vector<8x128xbf16>, vector<128x512xbf16>, vector<8x512xf32> -> vector<8x512xf32>
    %57 = arith.addf %54, %56 : vector<8x512xf32>
    %58 = vector.extract_strided_slice %57 {offsets = [0, 0], sizes = [8, 384], strides = [1, 1]} : vector<8x512xf32> to vector<8x384xf32>
    %59 = arith.negf %58 : vector<8x384xf32>
    %60 = math.exp %59 : vector<8x384xf32>
    %cst_27 = arith.constant 1.000000e+00 : f32
    %61 = vector.broadcast %cst_27 : f32 to vector<8x384xf32>
    %62 = arith.addf %61, %60 : vector<8x384xf32>
    %63 = arith.divf %61, %62 : vector<8x384xf32>
    %64 = vector.extract_strided_slice %63 {offsets = [0, 0], sizes = [8, 128], strides = [1, 1]} : vector<8x384xf32> to vector<8x128xf32>
    %65 = vector.extract_strided_slice %63 {offsets = [0, 128], sizes = [8, 128], strides = [1, 1]} : vector<8x384xf32> to vector<8x128xf32>
    %66 = vector.extract_strided_slice %63 {offsets = [0, 256], sizes = [8, 128], strides = [1, 1]} : vector<8x384xf32> to vector<8x128xf32>
    %67 = vector.extract_strided_slice %57 {offsets = [0, 384], sizes = [8, 128], strides = [1, 1]} : vector<8x512xf32> to vector<8x128xf32>
    %68 = math.tanh %67 : vector<8x128xf32>
    %69 = arith.mulf %65, %22 : vector<8x128xf32>
    %70 = arith.mulf %64, %68 : vector<8x128xf32>
    %71 = arith.addf %69, %70 : vector<8x128xf32>
    %72 = math.tanh %71 : vector<8x128xf32>
    %73 = arith.mulf %66, %72 : vector<8x128xf32>
    %74 = vector.broadcast %c0_i32_21 : i32 to vector<8x1xi32>
    %75 = arith.cmpi slt, %74, %18 : vector<8x1xi32>
    %76 = vector.shape_cast %75 : vector<8x1xi1> to vector<8x1xi1>
    %77 = vector.broadcast %76 : vector<8x1xi1> to vector<8x128xi1>
    %78 = arith.select %77, %73, %20 : vector<8x128xi1>, vector<8x128xf32>
    %79 = vector.shape_cast %75 : vector<8x1xi1> to vector<8x1xi1>
    %80 = vector.broadcast %79 : vector<8x1xi1> to vector<8x128xi1>
    %81 = arith.select %80, %71, %22 : vector<8x128xi1>, vector<8x128xf32>
    %c1_i32 = arith.constant 1 : i32
    %82 = arith.index_cast %c1_i32 : i32 to index
    %c0_28 = arith.constant 0 : index
    %c0_29 = arith.constant 0 : index
    %83 = vector.load %arg12[%82, %c0_28, %c0_29] : memref<4x16x512xf32, #tpu.memory_space<vmem>>, vector<1x16x512xf32>
    %84 = vector.shape_cast %83 : vector<1x16x512xf32> to vector<16x512xf32>
    %85 = vector.extract_strided_slice %84 {offsets = [0, 0], sizes = [8, 512], strides = [1, 1]} : vector<16x512xf32> to vector<8x512xf32>
    %86 = arith.truncf %50 : vector<8x128xf32> to vector<8x128xbf16>
    %cst_30 = arith.constant dense<0.000000e+00> : vector<8x512xf32>
    %87 = tpu.matmul %86, %12, %cst_30 {dimension_numbers = #tpu.dot_dimension_numbers<[1], [0], [0], [1], [0, 0, 1, 1], [], []>} : vector<8x128xbf16>, vector<128x512xbf16>, vector<8x512xf32> -> vector<8x512xf32>
    %88 = arith.addf %85, %87 : vector<8x512xf32>
    %89 = vector.extract_strided_slice %88 {offsets = [0, 0], sizes = [8, 384], strides = [1, 1]} : vector<8x512xf32> to vector<8x384xf32>
    %90 = arith.negf %89 : vector<8x384xf32>
    %91 = math.exp %90 : vector<8x384xf32>
    %cst_31 = arith.constant 1.000000e+00 : f32
    %92 = vector.broadcast %cst_31 : f32 to vector<8x384xf32>
    %93 = arith.addf %92, %91 : vector<8x384xf32>
    %94 = arith.divf %92, %93 : vector<8x384xf32>
    %95 = vector.extract_strided_slice %94 {offsets = [0, 0], sizes = [8, 128], strides = [1, 1]} : vector<8x384xf32> to vector<8x128xf32>
    %96 = vector.extract_strided_slice %94 {offsets = [0, 128], sizes = [8, 128], strides = [1, 1]} : vector<8x384xf32> to vector<8x128xf32>
    %97 = vector.extract_strided_slice %94 {offsets = [0, 256], sizes = [8, 128], strides = [1, 1]} : vector<8x384xf32> to vector<8x128xf32>
    %98 = vector.extract_strided_slice %88 {offsets = [0, 384], sizes = [8, 128], strides = [1, 1]} : vector<8x512xf32> to vector<8x128xf32>
    %99 = math.tanh %98 : vector<8x128xf32>
    %100 = arith.mulf %96, %53 : vector<8x128xf32>
    %101 = arith.mulf %95, %99 : vector<8x128xf32>
    %102 = arith.addf %100, %101 : vector<8x128xf32>
    %103 = math.tanh %102 : vector<8x128xf32>
    %104 = arith.mulf %97, %103 : vector<8x128xf32>
    %105 = vector.broadcast %c1_i32 : i32 to vector<8x1xi32>
    %106 = arith.cmpi slt, %105, %17 : vector<8x1xi32>
    %107 = vector.shape_cast %106 : vector<8x1xi1> to vector<8x1xi1>
    %108 = vector.broadcast %107 : vector<8x1xi1> to vector<8x128xi1>
    %109 = arith.select %108, %104, %50 : vector<8x128xi1>, vector<8x128xf32>
    %110 = vector.shape_cast %106 : vector<8x1xi1> to vector<8x1xi1>
    %111 = vector.broadcast %110 : vector<8x1xi1> to vector<8x128xi1>
    %112 = arith.select %111, %102, %53 : vector<8x128xi1>, vector<8x128xf32>
    %113 = vector.extract_strided_slice %84 {offsets = [8, 0], sizes = [8, 512], strides = [1, 1]} : vector<16x512xf32> to vector<8x512xf32>
    %114 = arith.truncf %78 : vector<8x128xf32> to vector<8x128xbf16>
    %cst_32 = arith.constant dense<0.000000e+00> : vector<8x512xf32>
    %115 = tpu.matmul %114, %12, %cst_32 {dimension_numbers = #tpu.dot_dimension_numbers<[1], [0], [0], [1], [0, 0, 1, 1], [], []>} : vector<8x128xbf16>, vector<128x512xbf16>, vector<8x512xf32> -> vector<8x512xf32>
    %116 = arith.addf %113, %115 : vector<8x512xf32>
    %117 = vector.extract_strided_slice %116 {offsets = [0, 0], sizes = [8, 384], strides = [1, 1]} : vector<8x512xf32> to vector<8x384xf32>
    %118 = arith.negf %117 : vector<8x384xf32>
    %119 = math.exp %118 : vector<8x384xf32>
    %cst_33 = arith.constant 1.000000e+00 : f32
    %120 = vector.broadcast %cst_33 : f32 to vector<8x384xf32>
    %121 = arith.addf %120, %119 : vector<8x384xf32>
    %122 = arith.divf %120, %121 : vector<8x384xf32>
    %123 = vector.extract_strided_slice %122 {offsets = [0, 0], sizes = [8, 128], strides = [1, 1]} : vector<8x384xf32> to vector<8x128xf32>
    %124 = vector.extract_strided_slice %122 {offsets = [0, 128], sizes = [8, 128], strides = [1, 1]} : vector<8x384xf32> to vector<8x128xf32>
    %125 = vector.extract_strided_slice %122 {offsets = [0, 256], sizes = [8, 128], strides = [1, 1]} : vector<8x384xf32> to vector<8x128xf32>
    %126 = vector.extract_strided_slice %116 {offsets = [0, 384], sizes = [8, 128], strides = [1, 1]} : vector<8x512xf32> to vector<8x128xf32>
    %127 = math.tanh %126 : vector<8x128xf32>
    %128 = arith.mulf %124, %81 : vector<8x128xf32>
    %129 = arith.mulf %123, %127 : vector<8x128xf32>
    %130 = arith.addf %128, %129 : vector<8x128xf32>
    %131 = math.tanh %130 : vector<8x128xf32>
    %132 = arith.mulf %125, %131 : vector<8x128xf32>
    %133 = vector.broadcast %c1_i32 : i32 to vector<8x1xi32>
    %134 = arith.cmpi slt, %133, %18 : vector<8x1xi32>
    %135 = vector.shape_cast %134 : vector<8x1xi1> to vector<8x1xi1>
    %136 = vector.broadcast %135 : vector<8x1xi1> to vector<8x128xi1>
    %137 = arith.select %136, %132, %78 : vector<8x128xi1>, vector<8x128xf32>
    %138 = vector.shape_cast %134 : vector<8x1xi1> to vector<8x1xi1>
    %139 = vector.broadcast %138 : vector<8x1xi1> to vector<8x128xi1>
    %140 = arith.select %139, %130, %81 : vector<8x128xi1>, vector<8x128xf32>
    %c2_i32 = arith.constant 2 : i32
    %141 = arith.index_cast %c2_i32 : i32 to index
    %c0_34 = arith.constant 0 : index
    %c0_35 = arith.constant 0 : index
    %142 = vector.load %arg12[%141, %c0_34, %c0_35] : memref<4x16x512xf32, #tpu.memory_space<vmem>>, vector<1x16x512xf32>
    %143 = vector.shape_cast %142 : vector<1x16x512xf32> to vector<16x512xf32>
    %144 = vector.extract_strided_slice %143 {offsets = [0, 0], sizes = [8, 512], strides = [1, 1]} : vector<16x512xf32> to vector<8x512xf32>
    %145 = arith.truncf %109 : vector<8x128xf32> to vector<8x128xbf16>
    %cst_36 = arith.constant dense<0.000000e+00> : vector<8x512xf32>
    %146 = tpu.matmul %145, %12, %cst_36 {dimension_numbers = #tpu.dot_dimension_numbers<[1], [0], [0], [1], [0, 0, 1, 1], [], []>} : vector<8x128xbf16>, vector<128x512xbf16>, vector<8x512xf32> -> vector<8x512xf32>
    %147 = arith.addf %144, %146 : vector<8x512xf32>
    %148 = vector.extract_strided_slice %147 {offsets = [0, 0], sizes = [8, 384], strides = [1, 1]} : vector<8x512xf32> to vector<8x384xf32>
    %149 = arith.negf %148 : vector<8x384xf32>
    %150 = math.exp %149 : vector<8x384xf32>
    %cst_37 = arith.constant 1.000000e+00 : f32
    %151 = vector.broadcast %cst_37 : f32 to vector<8x384xf32>
    %152 = arith.addf %151, %150 : vector<8x384xf32>
    %153 = arith.divf %151, %152 : vector<8x384xf32>
    %154 = vector.extract_strided_slice %153 {offsets = [0, 0], sizes = [8, 128], strides = [1, 1]} : vector<8x384xf32> to vector<8x128xf32>
    %155 = vector.extract_strided_slice %153 {offsets = [0, 128], sizes = [8, 128], strides = [1, 1]} : vector<8x384xf32> to vector<8x128xf32>
    %156 = vector.extract_strided_slice %153 {offsets = [0, 256], sizes = [8, 128], strides = [1, 1]} : vector<8x384xf32> to vector<8x128xf32>
    %157 = vector.extract_strided_slice %147 {offsets = [0, 384], sizes = [8, 128], strides = [1, 1]} : vector<8x512xf32> to vector<8x128xf32>
    %158 = math.tanh %157 : vector<8x128xf32>
    %159 = arith.mulf %155, %112 : vector<8x128xf32>
    %160 = arith.mulf %154, %158 : vector<8x128xf32>
    %161 = arith.addf %159, %160 : vector<8x128xf32>
    %162 = math.tanh %161 : vector<8x128xf32>
    %163 = arith.mulf %156, %162 : vector<8x128xf32>
    %164 = vector.broadcast %c2_i32 : i32 to vector<8x1xi32>
    %165 = arith.cmpi slt, %164, %17 : vector<8x1xi32>
    %166 = vector.shape_cast %165 : vector<8x1xi1> to vector<8x1xi1>
    %167 = vector.broadcast %166 : vector<8x1xi1> to vector<8x128xi1>
    %168 = arith.select %167, %163, %109 : vector<8x128xi1>, vector<8x128xf32>
    %169 = vector.shape_cast %165 : vector<8x1xi1> to vector<8x1xi1>
    %170 = vector.broadcast %169 : vector<8x1xi1> to vector<8x128xi1>
    %171 = arith.select %170, %161, %112 : vector<8x128xi1>, vector<8x128xf32>
    %172 = vector.extract_strided_slice %143 {offsets = [8, 0], sizes = [8, 512], strides = [1, 1]} : vector<16x512xf32> to vector<8x512xf32>
    %173 = arith.truncf %137 : vector<8x128xf32> to vector<8x128xbf16>
    %cst_38 = arith.constant dense<0.000000e+00> : vector<8x512xf32>
    %174 = tpu.matmul %173, %12, %cst_38 {dimension_numbers = #tpu.dot_dimension_numbers<[1], [0], [0], [1], [0, 0, 1, 1], [], []>} : vector<8x128xbf16>, vector<128x512xbf16>, vector<8x512xf32> -> vector<8x512xf32>
    %175 = arith.addf %172, %174 : vector<8x512xf32>
    %176 = vector.extract_strided_slice %175 {offsets = [0, 0], sizes = [8, 384], strides = [1, 1]} : vector<8x512xf32> to vector<8x384xf32>
    %177 = arith.negf %176 : vector<8x384xf32>
    %178 = math.exp %177 : vector<8x384xf32>
    %cst_39 = arith.constant 1.000000e+00 : f32
    %179 = vector.broadcast %cst_39 : f32 to vector<8x384xf32>
    %180 = arith.addf %179, %178 : vector<8x384xf32>
    %181 = arith.divf %179, %180 : vector<8x384xf32>
    %182 = vector.extract_strided_slice %181 {offsets = [0, 0], sizes = [8, 128], strides = [1, 1]} : vector<8x384xf32> to vector<8x128xf32>
    %183 = vector.extract_strided_slice %181 {offsets = [0, 128], sizes = [8, 128], strides = [1, 1]} : vector<8x384xf32> to vector<8x128xf32>
    %184 = vector.extract_strided_slice %181 {offsets = [0, 256], sizes = [8, 128], strides = [1, 1]} : vector<8x384xf32> to vector<8x128xf32>
    %185 = vector.extract_strided_slice %175 {offsets = [0, 384], sizes = [8, 128], strides = [1, 1]} : vector<8x512xf32> to vector<8x128xf32>
    %186 = math.tanh %185 : vector<8x128xf32>
    %187 = arith.mulf %183, %140 : vector<8x128xf32>
    %188 = arith.mulf %182, %186 : vector<8x128xf32>
    %189 = arith.addf %187, %188 : vector<8x128xf32>
    %190 = math.tanh %189 : vector<8x128xf32>
    %191 = arith.mulf %184, %190 : vector<8x128xf32>
    %192 = vector.broadcast %c2_i32 : i32 to vector<8x1xi32>
    %193 = arith.cmpi slt, %192, %18 : vector<8x1xi32>
    %194 = vector.shape_cast %193 : vector<8x1xi1> to vector<8x1xi1>
    %195 = vector.broadcast %194 : vector<8x1xi1> to vector<8x128xi1>
    %196 = arith.select %195, %191, %137 : vector<8x128xi1>, vector<8x128xf32>
    %197 = vector.shape_cast %193 : vector<8x1xi1> to vector<8x1xi1>
    %198 = vector.broadcast %197 : vector<8x1xi1> to vector<8x128xi1>
    %199 = arith.select %198, %189, %140 : vector<8x128xi1>, vector<8x128xf32>
    %c3_i32 = arith.constant 3 : i32
    %200 = arith.index_cast %c3_i32 : i32 to index
    %c0_40 = arith.constant 0 : index
    %c0_41 = arith.constant 0 : index
    %201 = vector.load %arg12[%200, %c0_40, %c0_41] : memref<4x16x512xf32, #tpu.memory_space<vmem>>, vector<1x16x512xf32>
    %202 = vector.shape_cast %201 : vector<1x16x512xf32> to vector<16x512xf32>
    %203 = vector.extract_strided_slice %202 {offsets = [0, 0], sizes = [8, 512], strides = [1, 1]} : vector<16x512xf32> to vector<8x512xf32>
    %204 = arith.truncf %168 : vector<8x128xf32> to vector<8x128xbf16>
    %cst_42 = arith.constant dense<0.000000e+00> : vector<8x512xf32>
    %205 = tpu.matmul %204, %12, %cst_42 {dimension_numbers = #tpu.dot_dimension_numbers<[1], [0], [0], [1], [0, 0, 1, 1], [], []>} : vector<8x128xbf16>, vector<128x512xbf16>, vector<8x512xf32> -> vector<8x512xf32>
    %206 = arith.addf %203, %205 : vector<8x512xf32>
    %207 = vector.extract_strided_slice %206 {offsets = [0, 0], sizes = [8, 384], strides = [1, 1]} : vector<8x512xf32> to vector<8x384xf32>
    %208 = arith.negf %207 : vector<8x384xf32>
    %209 = math.exp %208 : vector<8x384xf32>
    %cst_43 = arith.constant 1.000000e+00 : f32
    %210 = vector.broadcast %cst_43 : f32 to vector<8x384xf32>
    %211 = arith.addf %210, %209 : vector<8x384xf32>
    %212 = arith.divf %210, %211 : vector<8x384xf32>
    %213 = vector.extract_strided_slice %212 {offsets = [0, 0], sizes = [8, 128], strides = [1, 1]} : vector<8x384xf32> to vector<8x128xf32>
    %214 = vector.extract_strided_slice %212 {offsets = [0, 128], sizes = [8, 128], strides = [1, 1]} : vector<8x384xf32> to vector<8x128xf32>
    %215 = vector.extract_strided_slice %212 {offsets = [0, 256], sizes = [8, 128], strides = [1, 1]} : vector<8x384xf32> to vector<8x128xf32>
    %216 = vector.extract_strided_slice %206 {offsets = [0, 384], sizes = [8, 128], strides = [1, 1]} : vector<8x512xf32> to vector<8x128xf32>
    %217 = math.tanh %216 : vector<8x128xf32>
    %218 = arith.mulf %214, %171 : vector<8x128xf32>
    %219 = arith.mulf %213, %217 : vector<8x128xf32>
    %220 = arith.addf %218, %219 : vector<8x128xf32>
    %221 = math.tanh %220 : vector<8x128xf32>
    %222 = arith.mulf %215, %221 : vector<8x128xf32>
    %223 = vector.broadcast %c3_i32 : i32 to vector<8x1xi32>
    %224 = arith.cmpi slt, %223, %17 : vector<8x1xi32>
    %225 = vector.shape_cast %224 : vector<8x1xi1> to vector<8x1xi1>
    %226 = vector.broadcast %225 : vector<8x1xi1> to vector<8x128xi1>
    %227 = arith.select %226, %222, %168 : vector<8x128xi1>, vector<8x128xf32>
    %228 = vector.shape_cast %224 : vector<8x1xi1> to vector<8x1xi1>
    %229 = vector.broadcast %228 : vector<8x1xi1> to vector<8x128xi1>
    %230 = arith.select %229, %220, %171 : vector<8x128xi1>, vector<8x128xf32>
    %231 = vector.extract_strided_slice %202 {offsets = [8, 0], sizes = [8, 512], strides = [1, 1]} : vector<16x512xf32> to vector<8x512xf32>
    %232 = arith.truncf %196 : vector<8x128xf32> to vector<8x128xbf16>
    %cst_44 = arith.constant dense<0.000000e+00> : vector<8x512xf32>
    %233 = tpu.matmul %232, %12, %cst_44 {dimension_numbers = #tpu.dot_dimension_numbers<[1], [0], [0], [1], [0, 0, 1, 1], [], []>} : vector<8x128xbf16>, vector<128x512xbf16>, vector<8x512xf32> -> vector<8x512xf32>
    %234 = arith.addf %231, %233 : vector<8x512xf32>
    %235 = vector.extract_strided_slice %234 {offsets = [0, 0], sizes = [8, 384], strides = [1, 1]} : vector<8x512xf32> to vector<8x384xf32>
    %236 = arith.negf %235 : vector<8x384xf32>
    %237 = math.exp %236 : vector<8x384xf32>
    %cst_45 = arith.constant 1.000000e+00 : f32
    %238 = vector.broadcast %cst_45 : f32 to vector<8x384xf32>
    %239 = arith.addf %238, %237 : vector<8x384xf32>
    %240 = arith.divf %238, %239 : vector<8x384xf32>
    %241 = vector.extract_strided_slice %240 {offsets = [0, 0], sizes = [8, 128], strides = [1, 1]} : vector<8x384xf32> to vector<8x128xf32>
    %242 = vector.extract_strided_slice %240 {offsets = [0, 128], sizes = [8, 128], strides = [1, 1]} : vector<8x384xf32> to vector<8x128xf32>
    %243 = vector.extract_strided_slice %240 {offsets = [0, 256], sizes = [8, 128], strides = [1, 1]} : vector<8x384xf32> to vector<8x128xf32>
    %244 = vector.extract_strided_slice %234 {offsets = [0, 384], sizes = [8, 128], strides = [1, 1]} : vector<8x512xf32> to vector<8x128xf32>
    %245 = math.tanh %244 : vector<8x128xf32>
    %246 = arith.mulf %242, %199 : vector<8x128xf32>
    %247 = arith.mulf %241, %245 : vector<8x128xf32>
    %248 = arith.addf %246, %247 : vector<8x128xf32>
    %249 = math.tanh %248 : vector<8x128xf32>
    %250 = arith.mulf %243, %249 : vector<8x128xf32>
    %251 = vector.broadcast %c3_i32 : i32 to vector<8x1xi32>
    %252 = arith.cmpi slt, %251, %18 : vector<8x1xi32>
    %253 = vector.shape_cast %252 : vector<8x1xi1> to vector<8x1xi1>
    %254 = vector.broadcast %253 : vector<8x1xi1> to vector<8x128xi1>
    %255 = arith.select %254, %250, %196 : vector<8x128xi1>, vector<8x128xf32>
    %256 = vector.shape_cast %252 : vector<8x1xi1> to vector<8x1xi1>
    %257 = vector.broadcast %256 : vector<8x1xi1> to vector<8x128xi1>
    %258 = arith.select %257, %248, %199 : vector<8x128xi1>, vector<8x128xf32>
    %c4_i32_46 = arith.constant 4 : i32
    %c0_47 = arith.constant 0 : index
    %c0_48 = arith.constant 0 : index
    %259 = vector.load %arg10[%c0_47, %c0_48] : memref<16x128xf32, #tpu.memory_space<vmem>>, vector<8x128xf32>
    tpu.vector_store %arg10[%c0_47, %c0_48], %227 {strides = array<i32>} : memref<16x128xf32, #tpu.memory_space<vmem>>, vector<8x128xf32>,
    %c0_49 = arith.constant 0 : index
    %c0_50 = arith.constant 0 : index
    %260 = vector.load %arg11[%c0_49, %c0_50] : memref<16x128xf32, #tpu.memory_space<vmem>>, vector<8x128xf32>
    tpu.vector_store %arg11[%c0_49, %c0_50], %230 {strides = array<i32>} : memref<16x128xf32, #tpu.memory_space<vmem>>, vector<8x128xf32>,
    %c8_51 = arith.constant 8 : index
    %c0_52 = arith.constant 0 : index
    %261 = vector.load %arg10[%c8_51, %c0_52] : memref<16x128xf32, #tpu.memory_space<vmem>>, vector<8x128xf32>
    tpu.vector_store %arg10[%c8_51, %c0_52], %255 {strides = array<i32>} : memref<16x128xf32, #tpu.memory_space<vmem>>, vector<8x128xf32>,
    %c8_53 = arith.constant 8 : index
    %c0_54 = arith.constant 0 : index
    %262 = vector.load %arg11[%c8_53, %c0_54] : memref<16x128xf32, #tpu.memory_space<vmem>>, vector<8x128xf32>
    tpu.vector_store %arg11[%c8_53, %c0_54], %258 {strides = array<i32>} : memref<16x128xf32, #tpu.memory_space<vmem>>, vector<8x128xf32>,
    %c1_i32_55 = arith.constant 1 : i32
    %263 = arith.cmpi eq, %arg1, %c1_i32_55 : i32
    %264 = arith.extui %263 : i1 to i32
    %c0_i32_56 = arith.constant 0 : i32
    %265 = arith.cmpi ne, %264, %c0_i32_56 : i32
    scf.if %265 {
      %c0_57 = arith.constant 0 : index
      %c0_58 = arith.constant 0 : index
      %266 = vector.load %arg10[%c0_57, %c0_58] : memref<16x128xf32, #tpu.memory_space<vmem>>, vector<16x128xf32>
      %267 = arith.truncf %266 : vector<16x128xf32> to vector<16x128xbf16>
      %c0_59 = arith.constant 0 : index
      %c0_60 = arith.constant 0 : index
      %268 = vector.load %arg7[%c0_59, %c0_60] : memref<128x128xbf16, #tpu.memory_space<vmem>>, vector<128x128xbf16>
      %cst_61 = arith.constant dense<0.000000e+00> : vector<16x128xf32>
      %269 = tpu.matmul %267, %268, %cst_61 {dimension_numbers = #tpu.dot_dimension_numbers<[1], [0], [0], [1], [0, 0, 1, 1], [], []>} : vector<16x128xbf16>, vector<128x128xbf16>, vector<16x128xf32> -> vector<16x128xf32>
      %c0_62 = arith.constant 0 : index
      %c0_63 = arith.constant 0 : index
      %270 = vector.load %arg8[%c0_62, %c0_63] : memref<1x128xf32, #tpu.memory_space<vmem>>, vector<1x128xf32>
      %271 = vector.broadcast %270 : vector<1x128xf32> to vector<16x128xf32>
      %272 = arith.addf %269, %271 : vector<16x128xf32>
      %c0_64 = arith.constant 0 : index
      %c0_65 = arith.constant 0 : index
      %273 = vector.load %arg9[%c0_64, %c0_65] : memref<16x128xf32, #tpu.memory_space<vmem>>, vector<16x128xf32>
      tpu.vector_store %arg9[%c0_64, %c0_65], %272 {strides = array<i32>} : memref<16x128xf32, #tpu.memory_space<vmem>>, vector<16x128xf32>,
    } else {
    }
    return
  }
  func.func @transform_0(%arg0: i32, %arg1: i32) -> (i32, i32) {
    %c0_i32 = arith.constant 0 : i32
    %c0_i32_0 = arith.constant 0 : i32
    return %arg0, %c0_i32 : i32, i32
  }
  func.func @transform_1(%arg0: i32, %arg1: i32) -> (i32, i32, i32) {
    %c0_i32 = arith.constant 0 : i32
    %c0_i32_0 = arith.constant 0 : i32
    return %arg1, %arg0, %c0_i32 : i32, i32, i32
  }
  func.func @transform_2(%arg0: i32, %arg1: i32) -> (i32, i32) {
    %c0_i32 = arith.constant 0 : i32
    %c0_i32_0 = arith.constant 0 : i32
    %c0_i32_1 = arith.constant 0 : i32
    return %c0_i32, %c0_i32_0 : i32, i32
  }
  func.func @transform_3(%arg0: i32, %arg1: i32) -> (i32, i32) {
    %c0_i32 = arith.constant 0 : i32
    %c0_i32_0 = arith.constant 0 : i32
    %c0_i32_1 = arith.constant 0 : i32
    return %c0_i32, %c0_i32_0 : i32, i32
  }
  func.func @transform_4(%arg0: i32, %arg1: i32) -> (i32, i32) {
    %c0_i32 = arith.constant 0 : i32
    %c0_i32_0 = arith.constant 0 : i32
    %c0_i32_1 = arith.constant 0 : i32
    return %c0_i32, %c0_i32_0 : i32, i32
  }
  func.func @transform_5(%arg0: i32, %arg1: i32) -> (i32, i32) {
    %c0_i32 = arith.constant 0 : i32
    %c0_i32_0 = arith.constant 0 : i32
    %c0_i32_1 = arith.constant 0 : i32
    return %c0_i32, %c0_i32_0 : i32, i32
  }
  func.func @transform_6(%arg0: i32, %arg1: i32) -> (i32, i32) {
    %c0_i32 = arith.constant 0 : i32
    %c0_i32_0 = arith.constant 0 : i32
    %c0_i32_1 = arith.constant 0 : i32
    return %c0_i32, %c0_i32_0 : i32, i32
  }
  func.func @transform_7(%arg0: i32, %arg1: i32) -> (i32, i32) {
    %c0_i32 = arith.constant 0 : i32
    %c0_i32_0 = arith.constant 0 : i32
    return %arg0, %c0_i32 : i32, i32
  }
}

</mosaic_0001>

<bundles_post_ra>
// kernel: tpu_custom_call.1
= control target key start
LH: loop header
LB: loop body
LE: loop exit
PB: predicated region body
PF: predicated region fallthrough
CT: control target
= control target key end

     0   :  { %s3744_s0 = inlined_call_operand.vmem [shape: s32[16,1], index: 0, kind: input, shape index: {}]   ;;  %s3745_s1 = inlined_call_operand.hbm [shape: bf16[8,16,32], index: 1, kind: input, shape index: {}]   ;;  %s3746_s2 = inlined_call_operand.hbm [shape: bf16[32,512], index: 2, kind: input, shape index: {}]   ;;  %s3747_s3 = inlined_call_operand.hbm [shape: bf16[128,512], index: 3, kind: input, shape index: {}]   ;;  %s3748_s4 = inlined_call_operand.vmem [shape: f32[1,512], index: 4, kind: input, shape index: {}]   ;;  %s3749_s5 = inlined_call_operand.hbm [shape: bf16[128,128], index: 5, kind: input, shape index: {}]   ;;  %s3750_s6 = inlined_call_operand.vmem [shape: f32[1,128], index: 6, kind: input, shape index: {}]   ;;  %s3751_s7 = inlined_call_operand.hbm [shape: f32[16,128], index: 7, kind: output, shape index: {}]  }
   0x1   :  { %3760 = sst [smem:[#allocation42_spill]] %s3751_s7 }
   0x2   :  { %12 = vsyncpa [#allocation6], 0 }
   0x3   :  { %14 = vsyncpa [#allocation6 + $0x1], 0 }
   0x4   :  { %15 = vsyncpa [#allocation9], 0 }
   0x5   :  { %16 = vsyncpa [#allocation12], 0 }
   0x6   :  { %17 = vsyncpa [#allocation7], 0  ;;  %s2843_s24 = smov 0   ;;  %s2845_s25 = smov 0  }
   0x7   :  { %s2847_s26 = smov 0   ;;  %s2849_s27 = smov 0  }
   0x8   :  { %s2851_s28 = smov 0   ;;  %s2853_s29 = smov 0  }
   0x9 LB: > { %s3754_s30 = sadd.s32 4294967295, %s2786_s29   ;;  %p83_p0 = scmp.ne.s32.totalorder %s2770_s25, %s2766_s24  ;;  %s2786_s29 = sphi %s2853_s29, %s23_s29   ;;  %s2782_s28 = sphi %s2851_s28, %s3826_s28   ;;  %s2778_s27 = sphi %s2849_s27, %s3825_s27   ;;  %s2774_s26 = sphi %s2847_s26, %s3824_s26   ;;  %s2770_s25 = sphi %s2845_s25, %s3823_s25   ;;  %s2766_s24 = sphi %s2843_s24, %s3822_s24  }
   0xa   : > { %p2875_p1 = scmp.eq.s32.totalorder %s3754_s30, 0  ;;  %p2109_p2 = scmp.ge.s32.totalorder %s2786_s29, 1 }
   0xb   : > { %p225_p3 = scmp.lt.s32.totalorder %s2786_s29, 3  ;;  %s2788_s11 = smov [#allocation8]  }
   0xc   : > { %s3761_s8 = scalar_select %p2875_p1, 1, 0 }
   0xd   : > { %p2883_p4 = por %p2875_p1, %p83_p0  ;;  %p2887_p5 = pnand %p2109_p2, %p225_p3 }
   0xe   : > { %s246_s12 = sshll.u32 %s2788_s11, 4  ;;  %s2789_s14 = smov [#allocation10]   ;;  %s2891_s12 = int_to_ptr.vmem [resolvable:$true] %s246_s12 }
   0xf   : > { %s3762_s9 = scalar_select %p2883_p4, 1, 0 }
  0x10   : > { %s3763_s10 = scalar_select %p2887_p5, 1, 0 }
  0x11   : > { %p2265_p6 = pneg %p2887_p5  ;;  %s259_s15 = sshll.u32 %s2789_s14, 4  ;;  %s2901_s15 = int_to_ptr.vmem [resolvable:$true] %s259_s15 }
  0x12   : > { %s2790_s16 = smov [#allocation11]   ;;  %s2584_s20 = scalar_lea.hbm %s3746_s2, 1024 }
  0x13   : > { %p2897_p7 = pnand %p2265_p6, %p2875_p1  ;;  %s2903_s17 = sshll.u32 %s2790_s16, 4  ;;  %s276_s17 = int_to_ptr.vmem [resolvable:$true] %s2903_s17 }
  0x14   : > { %p2585_p8 = scmp.ne.s32.totalorder %s3746_s2, %s2584_s20  ;;  %p2591_p12 = scmp.lt.u32.totalorder %s2584_s20, %s3746_s2 }
  0x15   : > { %p2913_p9 = pneg %p2897_p7 }
  0x17   : > { %p2587_p10 = pnand %p2913_p9, %p2585_p8 }
  0x19   : > { %p2588_p11 = pneg %p2587_p10 }
  0x1b   : > { %p2593_p13 = pnand %p2591_p12, %p2588_p11 }
  0x1d   : > { %2596 = shalt.err (!%p2593_p13)
}
  0x1e   : > { %s2597_s14 = scalar_lea.vmem %s2891_s12, 1024  ;;  %p2605_p6 = scmp.lt.s32.totalorder %s2891_s12, %s2891_s12 }
  0x1f   : > { %p2598_p0 = scmp.ne.s32.totalorder %s2891_s12, %s2597_s14  ;;  %p2606_p1 = scmp.lt.s32.totalorder %s2597_s14, %s2597_s14 }
  0x21   : > { %p2600_p2 = pnand %p2598_p0, %p2913_p9  ;;  %p2607_p8 = por %p2606_p1, %p2605_p6 }
  0x23   : > { %p2601_p3 = pneg %p2600_p2 }
  0x25   : > { %p2608_p10 = pnand %p2607_p8, %p2601_p3 }
  0x27   : > { %2611 = shalt.err (!%p2608_p10)
}
  0x28   : > { %s2791_s16 = smov 256   ;;  %s2792_s18 = smov 16  }
  0x29   : > { %2268 = dma.hbm_to_vmem [thread:$0]  (!%p2897_p7), %s3746_s2, 1024, %s2891_s12, [#allocation9], %s2791_s16, %s2791_s16, %s2792_s18  }
  0x2a   : > { %s2612_s24 = scalar_lea.hbm %s3747_s3, 4096 }
  0x2b   : > { %p2613_p1 = scmp.ne.s32.totalorder %s3747_s3, %s2612_s24  ;;  %p2619_p13 = scmp.lt.u32.totalorder %s2612_s24, %s3747_s3 }
  0x2d   : > { %p2615_p11 = pnand %p2613_p1, %p2913_p9 }
  0x2f   : > { %p2616_p12 = pneg %p2615_p11 }
  0x31   : > { %p2621_p0 = pnand %p2619_p13, %p2616_p12 }
  0x33   : > { %2624 = shalt.err (!%p2621_p0)
}
  0x34   : > { %s2625_s12 = scalar_lea.vmem %s2901_s15, 4096  ;;  %p2633_p8 = scmp.lt.s32.totalorder %s2901_s15, %s2901_s15 }
  0x35   : > { %p2626_p2 = scmp.ne.s32.totalorder %s2901_s15, %s2625_s12  ;;  %p2634_p10 = scmp.lt.s32.totalorder %s2625_s12, %s2625_s12 }
  0x37   : > { %p2628_p3 = pnand %p2626_p2, %p2913_p9  ;;  %p2635_p1 = por %p2634_p10, %p2633_p8 }
  0x39   : > { %p2629_p6 = pneg %p2628_p3 }
  0x3b   : > { %p2636_p11 = pnand %p2635_p1, %p2629_p6 }
  0x3d   : > { %2639 = shalt.err (!%p2636_p11)
}
  0x3e   : > { %2271 = dma.hbm_to_vmem [thread:$0]  (!%p2897_p7), %s3747_s3, 4096, %s2901_s15, [#allocation9], %s2791_s16, %s2791_s16, %s2792_s18  }
  0x3f   : > { %s2640_s21 = scalar_lea.hbm %s3749_s5, 1024 }
  0x40   : > { %p2641_p12 = scmp.ne.s32.totalorder %s3749_s5, %s2640_s21  ;;  %p2647_p2 = scmp.lt.u32.totalorder %s2640_s21, %s3749_s5 }
  0x42   : > { %p2643_p13 = pnand %p2641_p12, %p2913_p9 }
  0x44   : > { %p2644_p0 = pneg %p2643_p13 }
  0x46   : > { %p2649_p3 = pnand %p2647_p2, %p2644_p0 }
  0x48   : > { %2652 = shalt.err (!%p2649_p3)
}
  0x49   : > { %s2653_s12 = scalar_lea.vmem %s276_s17, 1024  ;;  %p2661_p1 = scmp.lt.s32.totalorder %s276_s17, %s276_s17 }
  0x4a   : > { %p2654_p6 = scmp.ne.s32.totalorder %s276_s17, %s2653_s12  ;;  %p2662_p11 = scmp.lt.s32.totalorder %s2653_s12, %s2653_s12 }
  0x4c   : > { %p2656_p8 = pnand %p2654_p6, %p2913_p9  ;;  %p2663_p4 = por %p2662_p11, %p2661_p1 }
  0x4e   : > { %p2657_p10 = pneg %p2656_p8 }
  0x50   : > { %p2664_p5 = pnand %p2663_p4, %p2657_p10 }
  0x52   : > { %2667 = shalt.err (!%p2664_p5)
}
  0x53   : > { %s2793_s15 = smov 64   ;;  %s2794_s16 = smov 4  }
  0x54   : > { %2274 = dma.hbm_to_vmem [thread:$0]  (!%p2897_p7), %s3749_s5, 1024, %s276_s17, [#allocation12], %s2793_s15, %s2793_s15, %s2794_s16  }
  0x55   : > { %s32_s7 = sadd.s32 1, %s2782_s28  ;;  %p77_p4 = scmp.ne.s32.totalorder %s2774_s26, %s2770_s25 }
  0x56   : > { %p33_p5 = scmp.ge.s32.totalorder %s32_s7, 2  ;;  %p78_p9 = scmp.eq.s32.totalorder %s2786_s29, 0 }
  0x57   : > { %s70_s30 = sadd.s32 1, %s2774_s26  ;;  %s292_s19 = sand.u32 1, %s2774_s26  }
  0x58   : > { %s3828_s7 = smov (%p33_p5, %s32_s7), 0  ;;  %p79_p12 = por %p78_p9, %p77_p4 }
  0x59   : > { %p2282_p13 = scmp.lt.s32.totalorder %s2786_s29, 2  ;;  %s65_s13 = ssub.s32 %s2782_s28, %s3828_s7 }
  0x5a   : > { %s2115_s20 = sshll.u32 %s292_s19, 5  ;;  %p68_p0 = scmp.eq.s32.totalorder %s65_s13, 0 }
  0x5b   : > { %s2217_s21 = sshll.u32 %s2782_s28, 9  ;;  %s296_s22 = scalar_lea.vmem [#allocation5], %s2115_s20 }
  0x5c   : > { %s306_s24 = sshll.u32 %s296_s22, 4  ;;  %s2997_s12 = scalar_lea.hbm %s3745_s1, %s2217_s21  ;;  %s2999_s24 = int_to_ptr.vmem [resolvable:$true] %s306_s24 }
  0x5d   : > { %s2992_s11 = scalar_select %p68_p0, %s2774_s26, %s70_s30  }
  0x5e   : > { %p3001_p7 = pnand %p2282_p13, %p79_p12  ;;  %s3005_s18 = scalar_lea.sflag [#allocation6], %s292_s19 }
  0x5f   : > { %s2668_s30 = scalar_lea.hbm %s2997_s12, 512  ;;  %s2673_s21 = scalar_lea.hbm %s3745_s1, 1024 }
  0x60   : > { %p2669_p2 = scmp.ne.s32.totalorder %s2997_s12, %s2668_s30  ;;  %p2670_p3 = pneg %p3001_p7 }
  0x61   : > { %p2674_p10 = scmp.lt.u32.totalorder %s2997_s12, %s3745_s1  ;;  %p2675_p1 = scmp.lt.u32.totalorder %s2673_s21, %s2668_s30 }
  0x62   : > { %p2671_p6 = pnand %p2670_p3, %p2669_p2  ;;  %p2677_p4 = scmp.lt.u32.totalorder %s2668_s30, %s2997_s12 }
  0x63   : > { %p2676_p11 = por %p2675_p1, %p2674_p10 }
  0x64   : > { %p2672_p8 = pneg %p2671_p6 }
  0x65   : > { %p2678_p5 = por %p2677_p4, %p2676_p11 }
  0x67   : > { %p2679_p9 = pnand %p2678_p5, %p2672_p8 }
  0x69   : > { %2682 = shalt.err (!%p2679_p9)
}
  0x6a   : > { %s2683_s19 = scalar_lea.vmem %s2999_s24, 512  ;;  %s2795_s14 = smov [#allocation5]  }
  0x6b   : > { %p2684_p12 = scmp.ne.s32.totalorder %s2999_s24, %s2683_s19  ;;  %s2688_s13 = sshll.u32 %s2795_s14, 4  ;;  %s2689_s13 = int_to_ptr.vmem [resolvable:$false] %s2688_s13 }
  0x6c   : > { %s2690_s20 = scalar_lea.vmem %s2689_s13, 1024  ;;  %p2691_p2 = scmp.lt.s32.totalorder %s2999_s24, %s2689_s13 }
  0x6d   : > { %p2686_p13 = pnand %p2684_p12, %p2670_p3  ;;  %p2692_p6 = scmp.lt.s32.totalorder %s2690_s20, %s2683_s19 }
  0x6f   : > { %p2687_p0 = pneg %p2686_p13  ;;  %p2693_p10 = por %p2692_p6, %p2691_p2 }
  0x71   : > { %p2694_p1 = pnand %p2693_p10, %p2687_p0 }
  0x73   : > { %2697 = shalt.err (!%p2694_p1)
}
  0x74   : > { %2278 = dma.hbm_to_vmem [thread:$0]  (!%p3001_p7), %s2997_s12, 512, %s2999_s24, %s3005_s18, %s2793_s15, %s2793_s15, %s2794_s16  }
  0x75   : > { %p3767_p3 = scmp.ne.s32.totalorder %s3763_s10, 0 }
  0x77   : > { %318 = sbr.rel (%p3767_p3) target bundleno = 1525 (0x5f5), region = 48 }
  0x7e   : > { %s320_s30 = sand.u32 1, %s2770_s25   ;;  %p3768_p8 = scmp.ne.s32.totalorder %s3762_s9, 0 }
  0x7f   : > { %s2120_s21 = sshll.u32 %s320_s30, 5  ;;  %s321_s22 = scalar_lea.sflag [#allocation6], %s320_s30 }
  0x80   : > { %s3039_s17 = scalar_lea.vmem [#allocation5], %s2120_s21 }
  0x81   : > { %2749 = dma.done.wait (%p3768_p8), %s321_s22, 512  }
  0x82   : > { %2751 = vsyncadd (%p3768_p8), %s321_s22, 4294966784  ;;  %p3769_p11 = scmp.ne.s32.totalorder %s3761_s8, 0 }
  0x84   : > { %2753 = dma.done.wait (%p3769_p11), [#allocation9], 5120  }
  0x85   : > { %2755 = vsyncadd (%p3769_p11), [#allocation9], 4294962176 }
  0x86   : > { %2757 = dma.done.wait (%p3769_p11), [#allocation12], 1024  }
  0x87   : > { %2759 = vsyncadd (%p3769_p11), [#allocation12], 4294966272  ;;  %p2124_p7 = scmp.ne.s32.totalorder %s2778_s27, 0 }
  0x88   : > { %v2796_v0 = vmov (!%p2124_p7), 0.0  }
  0x89   : > { %380 = sbr.rel (%p2124_p7) target bundleno = 144 (0x90), region = 68  ;;  %381 = vst [vmem:[#allocation2] sm:$0xff] (!%p2124_p7), %v2796_v0  ;;  %382 = vst [vmem:[#allocation2 + $0x8] sm:$0xff] (!%p2124_p7), %v2796_v0 }
  0x8a   : > { %383 = vst [vmem:[#allocation3] sm:$0xff] (!%p2124_p7), %v2796_v0  ;;  %384 = vst [vmem:[#allocation3 + $0x8] sm:$0xff] (!%p2124_p7), %v2796_v0 }
  0x90 PF: > { %v2352_v1 = vld [vmem:[#allocation8 + $0x4] ss:$16 sps:$4 sm:$0xff]   ;;  %v2354_v2 = vld [vmem:[#allocation8 + $0xc] ss:$16 sps:$4 sm:$0xff]   ;;  %v3758_v3 = vmov 0   ;;  %vm483_vm0 = vcmask 261120   ;;  %v403_v62 = vlaneseq }
  0x91   : > { %528 = vmatprep.mubr.bf16.mxu0 %v3758_v3  ;;  %601 = vmatprep.mubr.bf16.mxu1 %v3758_v3  ;;  %v2356_v4 = vld [vmem:[#allocation8] ss:$16 sps:$4 sm:$0xff]   ;;  %v2357_v5 = vld [vmem:[#allocation8 + $0x8] ss:$16 sps:$4 sm:$0xff]   ;;  %v2358_v6 = vld [vmem:[#allocation8 + $0x24] ss:$16 sps:$4 sm:$0xff]  }
  0x92   : > { %496 = vmatprep.subr.bf16.mxu0 %v2352_v1  ;;  %2350 = vset.pattern.permute.xlu0 %v3758_v3  ;;  %v2360_v7 = vld [vmem:[#allocation8 + $0x2c] ss:$16 sps:$4 sm:$0xff]   ;;  %v2362_v8 = vld [vmem:[#allocation8 + $0x20] ss:$16 sps:$4 sm:$0xff]   ;;  %v2363_v9 = vld [vmem:[#allocation8 + $0x28] ss:$16 sps:$4 sm:$0xff]  }
  0x93   : > { %569 = vmatprep.subr.bf16.mxu1 %v2354_v2  ;;  %2351 = vset.pattern.permute.xlu1 %v3758_v3  ;;  %v2364_v10 = vld [vmem:[%s3039_s17] sm:$0xff]   ;;  %v3061_v12 = vld [vmem:[#allocation10 + $0xc] ss:$16 sps:$4 sm:$0xff]   ;;  %v3065_v14 = vld [vmem:[#allocation10 + $0x8] ss:$16 sps:$4 sm:$0xff]   ;;  %s2145_s8 = sshll.u32 %s2778_s27, 2 }
  0x94   : > { %497 = vmatpush1.bf16.msra.mxu0 %v2356_v4  ;;  %570 = vmatpush1.bf16.msra.mxu1 %v2357_v5  ;;  %v3059_v11 = vld [vmem:[#allocation10 + $0x4] ss:$16 sps:$4 sm:$0xff]   ;;  %v3063_v13 = vld [vmem:[#allocation10] ss:$16 sps:$4 sm:$0xff]   ;;  %v3071_v16 = vld [vmem:[#allocation10 + $0x2c] ss:$16 sps:$4 sm:$0xff]   ;;  %v709_v39 = vstv %s2145_s8 }
  0x95   : > { %498 = vmatprep.subr.bf16.mxu0 %v2358_v6  ;;  %571 = vmatprep.subr.bf16.mxu1 %v2360_v7  ;;  %v3068_v15 = vld [vmem:[#allocation10 + $0x24] ss:$16 sps:$4 sm:$0xff]   ;;  %v3075_v17 = vld [vmem:[#allocation10 + $0x20] ss:$16 sps:$4 sm:$0xff]   ;;  %v3079_v18 = vld [vmem:[#allocation10 + $0x28] ss:$16 sps:$4 sm:$0xff]  }
  0x96   : > { %v3083_v19 = vld [vmem:[#allocation10 + $0x44] ss:$16 sps:$4 sm:$0xff]   ;;  %v2377_v20 = vld [vmem:[%s3039_s17 + $0x8] sm:$0xff]   ;;  %v3090_v22 = vld [vmem:[#allocation10 + $0x40] ss:$16 sps:$4 sm:$0xff]   ;;  %v404_v0 = vshrl.u32 %v403_v62, 7 }
  0x97   : > { %v3088_v21 = vld [vmem:[#allocation10 + $0x4c] ss:$16 sps:$4 sm:$0xff]   ;;  %v3094_v23 = vld [vmem:[#allocation10 + $0x48] ss:$16 sps:$4 sm:$0xff]   ;;  %v3098_v24 = vld [vmem:[#allocation10 + $0x64] ss:$16 sps:$4 sm:$0xff]  }
  0x98   : > { %499 = vmatpush1.bf16.msra.mxu0 %v2362_v8  ;;  %572 = vmatpush1.bf16.msra.mxu1 %v2363_v9  ;;  %v3100_v25 = vld [vmem:[#allocation10 + $0x6c] ss:$16 sps:$4 sm:$0xff]   ;;  %v3104_v26 = vld [vmem:[#allocation10 + $0x60] ss:$16 sps:$4 sm:$0xff]   ;;  %v3108_v27 = vld [vmem:[#allocation10 + $0x68] ss:$16 sps:$4 sm:$0xff]  }
  0x99   : > { %885 = vmatprep.subr.bf16.mxu0 %v3059_v11  ;;  %926 = vmatprep.subr.bf16.mxu1 %v3061_v12  ;;  %v3112_v28 = vld [vmem:[#allocation10 + $0x84] ss:$16 sps:$4 sm:$0xff]   ;;  %v3114_v29 = vld [vmem:[#allocation10 + $0x8c] ss:$16 sps:$4 sm:$0xff]   ;;  %v3119_v31 = vld [vmem:[#allocation10 + $0x80] ss:$16 sps:$4 sm:$0xff]  }
  0x9a   : > { %v2390_v30 = vld [vmem:[%s3039_s17 + $0x10] sm:$0xff]   ;;  %v3121_v32 = vld [vmem:[#allocation10 + $0x88] ss:$16 sps:$4 sm:$0xff]   ;;  %v3129_v34 = vld [vmem:[#allocation10 + $0xac] ss:$16 sps:$4 sm:$0xff]   ;;  %v405_v8 = vsub.s32 0, %v404_v0 }
  0x9b   : > { %2137 = vmatmul.mubr.msk.bf16.vlgmr.msra.gmra.mrb[0].mxu0 %vm483_vm0, %v2364_v10  ;;  %2141 = vmatmul.mubr.msk.bf16.vlgmr.msra.gmra.mrb[0].mxu1 %vm483_vm0, %v2364_v10  ;;  %v3125_v33 = vld [vmem:[#allocation10 + $0xa4] ss:$16 sps:$4 sm:$0xff]   ;;  %v3134_v35 = vld [vmem:[#allocation10 + $0xa0] ss:$16 sps:$4 sm:$0xff]   ;;  %v3136_v36 = vld [vmem:[#allocation10 + $0xa8] ss:$16 sps:$4 sm:$0xff]  }
  0x9c   : > { %886 = vmatpush1.bf16.msra.mxu0 %v3063_v13  ;;  %927 = vmatpush1.bf16.msra.mxu1 %v3065_v14  ;;  %v3140_v37 = vld [vmem:[#allocation10 + $0xc4] ss:$16 sps:$4 sm:$0xff]   ;;  %v3144_v38 = vld [vmem:[#allocation10 + $0xcc] ss:$16 sps:$4 sm:$0xff]   ;;  %v3154_v42 = vld [vmem:[#allocation10 + $0xc0] ss:$16 sps:$4 sm:$0xff]  }
  0x9d   : > { %887 = vmatprep.subr.bf16.mxu0 %v3068_v15  ;;  %928 = vmatprep.subr.bf16.mxu1 %v3071_v16  ;;  %v2403_v40 = vld [vmem:[%s3039_s17 + $0x18] sm:$0xff]   ;;  %v707_v41 = vld [vmem:[%s3744_s0] sm:$0xff]  ;;  %v708_v47 = vld [vmem:[%s3744_s0 + $0x8] sm:$0xff]  ;;  %v413_v10 = vsub.s32 2, %v404_v0  ;;  %p2202_p4 = scmp.ne.s32.totalorder %s2778_s27, 1 }
  0x9e   : > { %538 = vmatprep.mubr.bf16.mxu0 %v3758_v3  ;;  %611 = vmatprep.mubr.bf16.mxu1 %v3758_v3  ;;  %v3156_v43 = vld [vmem:[#allocation10 + $0xc8] ss:$16 sps:$4 sm:$0xff]   ;;  %v3158_v44 = vsub.s32 %v707_v41, %v709_v39  ;;  %v3162_v45 = vld [vmem:[#allocation10 + $0xe4] ss:$16 sps:$4 sm:$0xff]   ;;  %v3164_v46 = vld [vmem:[#allocation10 + $0xec] ss:$16 sps:$4 sm:$0xff]   ;;  %v3183_v52 = vsub.s32 %v708_v47, %v709_v39 }
  0x9f   : > { %v3174_v48 = vld [vmem:[#allocation10 + $0xe0] ss:$16 sps:$4 sm:$0xff]   ;;  %v3176_v49 = vld [vmem:[#allocation10 + $0xe8] ss:$16 sps:$4 sm:$0xff]   ;;  %v409_v39 = vsub.s32 1, %v404_v0 }
  0xa0   : > { %888 = vmatpush1.bf16.msra.mxu0 %v3075_v17  ;;  %929 = vmatpush1.bf16.msra.mxu1 %v3079_v18  ;;  %vm995_vm1 = vcmp.gt.s32.totalorder %v3158_v44, 0  ;;  %v3178_v50 = vld [vmem:[#allocation2] sm:$0xff]  ;;  %vm1114_vm2 = vcmp.gt.s32.totalorder %v3183_v52, 0  ;;  %vm1489_vm3 = vcmp.gt.s32.totalorder %v3158_v44, 2  ;;  %vm1736_vm4 = vcmp.gt.s32.totalorder %v3158_v44, 3  ;;  %v3227_v57 = vld [vmem:[#allocation2 + $0x8] sm:$0xff] }
  0xa1   : > { %889 = vmatprep.subr.bf16.mxu0 %v3083_v19  ;;  %930 = vmatprep.subr.bf16.mxu1 %v3088_v21  ;;  %v996_v51 = vsel %vm995_vm1, 1, %v3758_v3  ;;  %v724_v53 = vpack.c.bf16 %v3178_v50, %v3178_v50  ;;  %v1115_v54 = vsel %vm1114_vm2, 1, %v3758_v3  ;;  %v1490_v55 = vsel %vm1489_vm3, 1, %v3758_v3 }
  0xa2   : > { %998 = vperm.xlu0 %2350, %v996_v51   ;;  %v1737_v56 = vsel %vm1736_vm4, 1, %v3758_v3  ;;  %v1003_v58 = vpack.c.bf16 %v3227_v57, %v3227_v57  ;;  %vm1242_vm5 = vcmp.gt.s32.totalorder %v3158_v44, 1  ;;  %vm1361_vm6 = vcmp.gt.s32.totalorder %v3183_v52, 1 }
  0xa3   : > { %2138 = vmatmul.mubr.msk.bf16.gmra.mrb[4].mxu0 %vm483_vm0, %v2377_v20  ;;  %2142 = vmatmul.mubr.msk.bf16.gmra.mrb[4].mxu1 %vm483_vm0, %v2377_v20  ;;  %v1243_v59 = vsel %vm1242_vm5, 1, %v3758_v3  ;;  %v1362_v60 = vsel %vm1361_vm6, 1, %v3758_v3  ;;  %vm1608_vm7 = vcmp.gt.s32.totalorder %v3183_v52, 2  ;;  %vm1855_vm8 = vcmp.gt.s32.totalorder %v3183_v52, 3 }
  0xa4   : > { %890 = vmatpush1.bf16.msra.mxu0 %v3090_v22  ;;  %931 = vmatpush1.bf16.msra.mxu1 %v3094_v23  ;;  %v1609_v61 = vsel %vm1608_vm7, 1, %v3758_v3  ;;  %v1856_v63 = vsel %vm1855_vm8, 1, %v3758_v3  ;;  %vm2799_vm1 = vmmov (!%p2202_p4), 0  }
  0xa5   : > { %891 = vmatprep.subr.bf16.mxu0 %v3098_v24  ;;  %932 = vmatprep.subr.bf16.mxu1 %v3100_v25 }
  0xa6   : > { %548 = vmatprep.mubr.bf16.mxu0 %v3758_v3  ;;  %621 = vmatprep.mubr.bf16.mxu1 %v3758_v3 }
  0xa7   : > { %1117 = vperm.xlu0 %2350, %v1115_v54   ;;  %1245 = vperm.xlu1 %2351, %v1243_v59  }
  0xa8   : > { %892 = vmatpush1.bf16.msra.mxu0 %v3104_v26  ;;  %933 = vmatpush1.bf16.msra.mxu1 %v3108_v27 }
  0xa9   : > { %893 = vmatprep.subr.bf16.mxu0 %v3112_v28  ;;  %934 = vmatprep.subr.bf16.mxu1 %v3114_v29 }
  0xab   : > { %2139 = vmatmul.mubr.msk.bf16.gmra.mrb[8].mxu0 %vm483_vm0, %v2390_v30  ;;  %2143 = vmatmul.mubr.msk.bf16.gmra.mrb[8].mxu1 %vm483_vm0, %v2390_v30  ;;  %v401_v30 = vld [vmem:[%s3748_s4] sm:$0xf] }
  0xac   : > { %894 = vmatpush1.bf16.msra.mxu0 %v3119_v31  ;;  %935 = vmatpush1.bf16.msra.mxu1 %v3121_v32  ;;  %v3298_v41 = vrot.slane %v401_v30, %v405_v8  ;;  %v3300_v44 = vrot.slane %v401_v30, %v413_v10  ;;  %v3302_v47 = vrot.slane %v401_v30, %v409_v39 }
  0xad   : > { %895 = vmatprep.subr.bf16.mxu0 %v3125_v33  ;;  %936 = vmatprep.subr.bf16.mxu1 %v3129_v34 }
  0xae   : > { %558 = vmatprep.mubr.bf16.mxu0 %v3758_v3  ;;  %631 = vmatprep.mubr.bf16.mxu1 %v3758_v3 }
  0xaf   : > { %1492 = vperm.xlu0 %2350, %v1490_v55   ;;  %1364 = vperm.xlu1 %2351, %v1362_v60  }
  0xb0   : > { %896 = vmatpush1.bf16.msra.mxu0 %v3134_v35  ;;  %937 = vmatpush1.bf16.msra.mxu1 %v3136_v36 }
  0xb1   : > { %897 = vmatprep.subr.bf16.mxu0 %v3140_v37  ;;  %938 = vmatprep.subr.bf16.mxu1 %v3144_v38 }
  0xb3   : > { %2140 = vmatmul.mubr.msk.bf16.gmra.mrb[12].mxu0 %vm483_vm0, %v2403_v40  ;;  %2144 = vmatmul.mubr.msk.bf16.gmra.mrb[12].mxu1 %vm483_vm0, %v2403_v40  ;;  %v417_v40 = vsub.s32 3, %v404_v0 }
  0xb4   : > { %898 = vmatpush1.bf16.msra.mxu0 %v3154_v42  ;;  %939 = vmatpush1.bf16.msra.mxu1 %v3156_v43 }
  0xb5   : > { %899 = vmatprep.subr.bf16.mxu0 %v3162_v45  ;;  %940 = vmatprep.subr.bf16.mxu1 %v3164_v46  ;;  %v3304_v52 = vrot.slane %v401_v30, %v417_v40 }
  0xb6   : > { %917 = vmatprep.mubr.bf16.mxu0 %v3758_v3  ;;  %958 = vmatprep.mubr.bf16.mxu1 %v3758_v3 }
  0xb7   : > { %1739 = vperm.xlu0 %2350, %v1737_v56   ;;  %1611 = vperm.xlu1 %2351, %v1609_v61  }
  0xb8   : > { %900 = vmatpush1.bf16.msra.mxu0 %v3174_v48  ;;  %941 = vmatpush1.bf16.msra.mxu1 %v3176_v49 }
  0xb9   : > { %1004 = vmatprep.subr.bf16.mxu0 %v3059_v11  ;;  %1045 = vmatprep.subr.bf16.mxu1 %v3061_v12 }
  0xbb   : > { %918 = vmatmul.mubr.bf16.vlgmr.msra.gmra.mrb[16].mxu0 %v724_v53  ;;  %959 = vmatmul.mubr.bf16.vlgmr.msra.gmra.mrb[16].mxu1 %v724_v53 }
  0xbc   : > { %1005 = vmatpush1.bf16.msra.mxu0 %v3063_v13  ;;  %1046 = vmatpush1.bf16.msra.mxu1 %v3065_v14 }
  0xbd   : > { %1006 = vmatprep.subr.bf16.mxu0 %v3068_v15  ;;  %1047 = vmatprep.subr.bf16.mxu1 %v3071_v16 }
  0xbe   : > { %1036 = vmatprep.mubr.bf16.mxu0 %v3758_v3  ;;  %1077 = vmatprep.mubr.bf16.mxu1 %v3758_v3 }
  0xbf   : > { %1858 = vperm.xlu1 %2351, %v1856_v63  }
  0xc0   : > { %1007 = vmatpush1.bf16.msra.mxu0 %v3075_v17  ;;  %1048 = vmatpush1.bf16.msra.mxu1 %v3079_v18 }
  0xc1   : > { %1008 = vmatprep.subr.bf16.mxu0 %v3083_v19  ;;  %1049 = vmatprep.subr.bf16.mxu1 %v3088_v21 }
  0xc4   : > { %1009 = vmatpush1.bf16.msra.mxu0 %v3090_v22  ;;  %1050 = vmatpush1.bf16.msra.mxu1 %v3094_v23 }
  0xc5   : > { %1010 = vmatprep.subr.bf16.mxu0 %v3098_v24  ;;  %1051 = vmatprep.subr.bf16.mxu1 %v3100_v25 }
  0xc8   : > { %1011 = vmatpush1.bf16.msra.mxu0 %v3104_v26  ;;  %1052 = vmatpush1.bf16.msra.mxu1 %v3108_v27 }
  0xc9   : > { %1012 = vmatprep.subr.bf16.mxu0 %v3112_v28  ;;  %1053 = vmatprep.subr.bf16.mxu1 %v3114_v29 }
  0xcc   : > { %1013 = vmatpush1.bf16.msra.mxu0 %v3119_v31  ;;  %1054 = vmatpush1.bf16.msra.mxu1 %v3121_v32 }
  0xcd   : > { %1014 = vmatprep.subr.bf16.mxu0 %v3125_v33  ;;  %1055 = vmatprep.subr.bf16.mxu1 %v3129_v34 }
  0xd0   : > { %1015 = vmatpush1.bf16.msra.mxu0 %v3134_v35  ;;  %1056 = vmatpush1.bf16.msra.mxu1 %v3136_v36 }
  0xd1   : > { %1016 = vmatprep.subr.bf16.mxu0 %v3140_v37  ;;  %1057 = vmatprep.subr.bf16.mxu1 %v3144_v38 }
  0xd4   : > { %1017 = vmatpush1.bf16.msra.mxu0 %v3154_v42  ;;  %1058 = vmatpush1.bf16.msra.mxu1 %v3156_v43 }
  0xd5   : > { %1018 = vmatprep.subr.bf16.mxu0 %v3162_v45  ;;  %1059 = vmatprep.subr.bf16.mxu1 %v3164_v46 }
  0xd8   : > { %1019 = vmatpush1.bf16.msra.mxu0 %v3174_v48  ;;  %1060 = vmatpush1.bf16.msra.mxu1 %v3176_v49 }
  0xd9   : > { %1132 = vmatprep.subr.bf16.mxu0 %v3059_v11  ;;  %1173 = vmatprep.subr.bf16.mxu1 %v3061_v12 }
  0xdb   : > { %1037 = vmatmul.mubr.bf16.vlgmr.msra.gmra.mrb[20].mxu0 %v1003_v58  ;;  %1078 = vmatmul.mubr.bf16.vlgmr.msra.gmra.mrb[20].mxu1 %v1003_v58 }
  0xdc   : > { %1133 = vmatpush1.bf16.msra.mxu0 %v3063_v13  ;;  %1174 = vmatpush1.bf16.msra.mxu1 %v3065_v14 }
  0xdd   : > { %1134 = vmatprep.subr.bf16.mxu0 %v3068_v15  ;;  %1175 = vmatprep.subr.bf16.mxu1 %v3071_v16 }
  0xde   : > { %1164 = vmatprep.mubr.bf16.mxu0 %v3758_v3  ;;  %1205 = vmatprep.mubr.bf16.mxu1 %v3758_v3 }
  0xe0   : > { %1135 = vmatpush1.bf16.msra.mxu0 %v3075_v17  ;;  %1176 = vmatpush1.bf16.msra.mxu1 %v3079_v18 }
  0xe1   : > { %1136 = vmatprep.subr.bf16.mxu0 %v3083_v19  ;;  %1177 = vmatprep.subr.bf16.mxu1 %v3088_v21 }
  0xe4   : > { %1137 = vmatpush1.bf16.msra.mxu0 %v3090_v22  ;;  %1178 = vmatpush1.bf16.msra.mxu1 %v3094_v23 }
  0xe5   : > { %1138 = vmatprep.subr.bf16.mxu0 %v3098_v24  ;;  %1179 = vmatprep.subr.bf16.mxu1 %v3100_v25 }
  0xe8   : > { %1139 = vmatpush1.bf16.msra.mxu0 %v3104_v26  ;;  %1180 = vmatpush1.bf16.msra.mxu1 %v3108_v27 }
  0xe9   : > { %1140 = vmatprep.subr.bf16.mxu0 %v3112_v28  ;;  %1181 = vmatprep.subr.bf16.mxu1 %v3114_v29 }
  0xec   : > { %1141 = vmatpush1.bf16.msra.mxu0 %v3119_v31  ;;  %1182 = vmatpush1.bf16.msra.mxu1 %v3121_v32 }
  0xed   : > { %1142 = vmatprep.subr.bf16.mxu0 %v3125_v33  ;;  %1183 = vmatprep.subr.bf16.mxu1 %v3129_v34 }
  0xf0   : > { %1143 = vmatpush1.bf16.msra.mxu0 %v3134_v35  ;;  %1184 = vmatpush1.bf16.msra.mxu1 %v3136_v36 }
  0xf1   : > { %1144 = vmatprep.subr.bf16.mxu0 %v3140_v37  ;;  %1185 = vmatprep.subr.bf16.mxu1 %v3144_v38 }
  0xf4   : > { %1145 = vmatpush1.bf16.msra.mxu0 %v3154_v42  ;;  %1186 = vmatpush1.bf16.msra.mxu1 %v3156_v43 }
  0xf5   : > { %1146 = vmatprep.subr.bf16.mxu0 %v3162_v45  ;;  %1187 = vmatprep.subr.bf16.mxu1 %v3164_v46 }
  0xf8   : > { %1147 = vmatpush1.bf16.msra.mxu0 %v3174_v48  ;;  %1188 = vmatpush1.bf16.msra.mxu1 %v3176_v49 }
  0xf9   : > { %1251 = vmatprep.subr.bf16.mxu0 %v3059_v11  ;;  %1292 = vmatprep.subr.bf16.mxu1 %v3061_v12 }
 0x16e   : > { %v3279_v1 = vpop.f32.mrb[0].mxu0  ;;  %v3281_v2 = vpop.f32.mrb[0].mxu1 }
 0x16f   : > { %v3283_v4 = vpop.f32.mrb[1].mxu0  ;;  %v3285_v5 = vpop.f32.mrb[1].mxu1 }
 0x170   : > { %v3287_v6 = vpop.f32.mrb[2].mxu0  ;;  %v3289_v7 = vpop.f32.mrb[2].mxu1 }
 0x171   : > { %v3291_v9 = vpop.f32.mrb[3].mxu0  ;;  %v3293_v20 = vpop.f32.mrb[3].mxu1 }
 0x176   : > { %v540_v51 = vpop.f32.mrb[4].mxu0  ;;  %v613_v53 = vpop.f32.mrb[4].mxu1 }
 0x177   : > { %v3307_v54 = vadd.f32 %v540_v51, %v3298_v41  ;;  %v542_v55 = vpop.f32.mrb[5].mxu0  ;;  %v3310_v56 = vadd.f32 %v613_v53, %v3300_v44  ;;  %v615_v58 = vpop.f32.mrb[5].mxu1 }
 0x178   : > { %v3313_v59 = vadd.f32 %v542_v55, %v3302_v47  ;;  %v544_v60 = vpop.f32.mrb[6].mxu0  ;;  %v3316_v61 = vadd.f32 %v615_v58, %v3304_v52  ;;  %v617_v62 = vpop.f32.mrb[6].mxu1 }
 0x179   : > { %3770 = vst [vmem:[#allocation18_spill] sm:$0xff] %v3307_v54  ;;  %3771 = vst [vmem:[#allocation19_spill] sm:$0xff] %v3310_v56  ;;  %v3319_v63 = vadd.f32 %v544_v60, %v3298_v41  ;;  %v546_v0 = vpop.f32.mrb[7].mxu0  ;;  %v3322_v8 = vadd.f32 %v617_v62, %v3300_v44  ;;  %v619_v10 = vpop.f32.mrb[7].mxu1 }
 0x17a   : > { %3772 = vst [vmem:[#allocation20_spill] sm:$0xff] %v3313_v59  ;;  %3773 = vst [vmem:[#allocation21_spill] sm:$0xff] %v3316_v61  ;;  %v3325_v30 = vadd.f32 %v546_v0, %v3302_v47  ;;  %v3328_v39 = vadd.f32 %v619_v10, %v3304_v52 }
 0x17b   : > { %3774 = vst [vmem:[#allocation22_spill] sm:$0xff] %v3319_v63  ;;  %3775 = vst [vmem:[#allocation23_spill] sm:$0xff] %v3322_v8 }
 0x17c   : > { %3776 = vst [vmem:[#allocation24_spill] sm:$0xff] %v3325_v30  ;;  %3777 = vst [vmem:[#allocation25_spill] sm:$0xff] %v3328_v39 }
 0x17e   : > { %v550_v40 = vpop.f32.mrb[8].mxu0  ;;  %v623_v51 = vpop.f32.mrb[8].mxu1 }
 0x17f   : > { %v3331_v53 = vadd.f32 %v550_v40, %v3298_v41  ;;  %v552_v55 = vpop.f32.mrb[9].mxu0  ;;  %v3334_v58 = vadd.f32 %v623_v51, %v3300_v44  ;;  %v625_v60 = vpop.f32.mrb[9].mxu1 }
 0x180   : > { %v3337_v62 = vadd.f32 %v552_v55, %v3302_v47  ;;  %v554_v3 = vpop.f32.mrb[10].mxu0  ;;  %v3340_v0 = vadd.f32 %v625_v60, %v3304_v52  ;;  %v627_v30 = vpop.f32.mrb[10].mxu1 }
 0x181   : > { %3778 = vst [vmem:[#allocation26_spill] sm:$0xff] %v3331_v53  ;;  %3779 = vst [vmem:[#allocation27_spill] sm:$0xff] %v3334_v58  ;;  %v3343_v10 = vadd.f32 %v554_v3, %v3298_v41  ;;  %v556_v39 = vpop.f32.mrb[11].mxu0  ;;  %v3346_v40 = vadd.f32 %v627_v30, %v3300_v44  ;;  %v629_v53 = vpop.f32.mrb[11].mxu1 }
 0x182   : > { %3780 = vst [vmem:[#allocation28_spill] sm:$0xff] %v3337_v62  ;;  %3781 = vst [vmem:[#allocation29_spill] sm:$0xff] %v3340_v0  ;;  %v3349_v51 = vadd.f32 %v556_v39, %v3302_v47  ;;  %v3352_v58 = vadd.f32 %v629_v53, %v3304_v52 }
 0x183   : > { %3782 = vst [vmem:[#allocation30_spill] sm:$0xff] %v3343_v10  ;;  %3783 = vst [vmem:[#allocation31_spill] sm:$0xff] %v3346_v40 }
 0x184   : > { %3784 = vst [vmem:[#allocation32_spill] sm:$0xff] %v3349_v51  ;;  %3785 = vst [vmem:[#allocation33_spill] sm:$0xff] %v3352_v58 }
 0x186   : > { %v560_v55 = vpop.f32.mrb[12].mxu0  ;;  %v633_v62 = vpop.f32.mrb[12].mxu1 }
 0x187   : > { %v3355_v60 = vadd.f32 %v560_v55, %v3298_v41  ;;  %v562_v0 = vpop.f32.mrb[13].mxu0  ;;  %v3358_v3 = vadd.f32 %v633_v62, %v3300_v44  ;;  %v635_v10 = vpop.f32.mrb[13].mxu1 }
 0x188   : > { %v3361_v30 = vadd.f32 %v562_v0, %v3302_v47  ;;  %v564_v40 = vpop.f32.mrb[14].mxu0  ;;  %v3364_v39 = vadd.f32 %v635_v10, %v3304_v52  ;;  %v637_v51 = vpop.f32.mrb[14].mxu1  ;;  %v531_v0 = vadd.f32 %v3279_v1, %v3298_v41  ;;  %v604_v10 = vadd.f32 %v3281_v2, %v3300_v44 }
 0x189   : > { %3786 = vst [vmem:[#allocation34_spill] sm:$0xff] %v3355_v60  ;;  %3787 = vst [vmem:[#allocation35_spill] sm:$0xff] %v3358_v3  ;;  %v3367_v53 = vadd.f32 %v564_v40, %v3298_v41  ;;  %v566_v58 = vpop.f32.mrb[15].mxu0  ;;  %v3370_v55 = vadd.f32 %v637_v51, %v3300_v44  ;;  %v639_v60 = vpop.f32.mrb[15].mxu1  ;;  %v533_v40 = vadd.f32 %v3283_v4, %v3302_v47 }
 0x18a   : > { %3788 = vst [vmem:[#allocation36_spill] sm:$0xff] %v3361_v30  ;;  %3789 = vst [vmem:[#allocation37_spill] sm:$0xff] %v3364_v39  ;;  %v3373_v62 = vadd.f32 %v566_v58, %v3302_v47  ;;  %v3376_v3 = vadd.f32 %v639_v60, %v3304_v52  ;;  %v606_v51 = vadd.f32 %v3285_v5, %v3304_v52 }
 0x18b   : > { %3790 = vst [vmem:[#allocation38_spill] sm:$0xff] %v3367_v53  ;;  %3791 = vst [vmem:[#allocation39_spill] sm:$0xff] %v3370_v55 }
 0x18c   : > { %3792 = vst [vmem:[#allocation40_spill] sm:$0xff] %v3373_v62  ;;  %3793 = vst [vmem:[#allocation41_spill] sm:$0xff] %v3376_v3 }
 0x18e   : > { %v919_v55 = vpop.f32.mrb[16].mxu0  ;;  %v960_v53 = vpop.f32.mrb[16].mxu1 }
 0x18f   : > { %v967_v39 = vadd.f32 %v919_v55, %v531_v0  ;;  %v969_v58 = vadd.f32 %v960_v53, %v604_v10  ;;  %v921_v62 = vpop.f32.mrb[17].mxu0  ;;  %v962_v30 = vpop.f32.mrb[17].mxu1  ;;  %v535_v0 = vadd.f32 %v3287_v6, %v3298_v41  ;;  %v610_v10 = vadd.f32 %v3293_v20, %v3304_v52 }
 0x190   : > { %v968_v60 = vadd.f32 %v921_v62, %v533_v40  ;;  %v970_v3 = vadd.f32 %v962_v30, %v606_v51  ;;  %v923_v8 = vpop.f32.mrb[18].mxu0  ;;  %v964_v63 = vpop.f32.mrb[18].mxu1 }
 0x191   : > { %v2178_v1 = vmul.f32 -1.442695, %v967_v39  ;;  %v924_v61 = vpop.f32.mrb[19].mxu0  ;;  %v965_v59 = vpop.f32.mrb[19].mxu1  ;;  %v2180_v4 = vmul.f32 -1.442695, %v969_v58 }
 0x192   : > { %v2179_v2 = vmul.f32 -1.442695, %v968_v60  ;;  %v714_v8 = vld [vmem:[#allocation3] sm:$0xff]  ;;  %v999_v63 = vpop.permute.xlu0 %998 }
 0x193   : > { %2416 = vpow2.f32 %v2178_v1  ;;  %vm1000_vm9 = vcmp.eq.s32.totalorder %v999_v63, 1 }
 0x194   : > { %2418 = vpow2.f32 %v2179_v2 }
 0x195   : > { %2420 = vtanh.f32 %v970_v3 }
 0x196   : > { %2422 = vpow2.f32 %v2180_v4 }
 0x19d   : > { %v2417_v56 = vpop.eup %2416 }
 0x19e   : > { %v980_v54 = vadd.f32 1.0, %v2417_v56  ;;  %v2419_v5 = vpop.eup %2418  ;;  %v608_v56 = vadd.f32 %v3289_v7, %v3300_v44 }
 0x19f   : > { %v981_v53 = vadd.f32 1.0, %v2419_v5  ;;  %v2421_v55 = vpop.eup %2420 }
 0x1a0   : > { %2424 = vrcp.f32 %v980_v54  ;;  %v2423_v62 = vpop.eup %2422  ;;  %v537_v54 = vadd.f32 %v3291_v9, %v3302_v47 }
 0x1a1   : > { %2426 = vrcp.f32 %v981_v53  ;;  %v982_v59 = vadd.f32 1.0, %v2423_v62 }
 0x1a3   : > { %2428 = vrcp.f32 %v982_v59 }
 0x1aa   : > { %v2425_v30 = vpop.eup %2424 }
 0x1ab   : > { %v991_v39 = vmul.f32 %v2425_v30, %v2421_v55  ;;  %v2427_v61 = vpop.eup %2426 }
 0x1ac   : > { %v990_v3 = vmul.f32 %v2427_v61, %v714_v8 }
 0x1ad   : > { %v2429_v53 = vpop.eup %2428 }
 0x1ae   : > { %v1038_v40 = vpop.f32.mrb[20].mxu0  ;;  %v1079_v51 = vpop.f32.mrb[20].mxu1  ;;  %v992_v58 = vadd.f32 %v991_v39, %v990_v3 }
 0x1af   : > { %v1086_v60 = vadd.f32 %v1038_v40, %v535_v0  ;;  %v1088_v1 = vadd.f32 %v1079_v51, %v608_v56  ;;  %v1040_v2 = vpop.f32.mrb[21].mxu0  ;;  %v1081_v4 = vpop.f32.mrb[21].mxu1 }
 0x1b0   : > { %v1087_v6 = vadd.f32 %v1040_v2, %v537_v54  ;;  %v1089_v41 = vadd.f32 %v1081_v4, %v610_v10  ;;  %v1042_v5 = vpop.f32.mrb[22].mxu0  ;;  %v1083_v7 = vpop.f32.mrb[22].mxu1  ;;  %2430 = vtanh.f32 %v992_v58  ;;  %v3395_v44 = vsel %vm1000_vm9, %v992_v58, %v714_v8  ;;  %v715_v10 = vld [vmem:[#allocation3 + $0x8] sm:$0xff] }
 0x1b1   : > { %v2181_v9 = vmul.f32 -1.442695, %v1086_v60  ;;  %v1043_v47 = vpop.f32.mrb[23].mxu0  ;;  %v1084_v20 = vpop.f32.mrb[23].mxu1  ;;  %v2183_v62 = vmul.f32 -1.442695, %v1088_v1 }
 0x1b2   : > { %v2182_v52 = vmul.f32 -1.442695, %v1087_v6  ;;  %v1118_v1 = vpop.permute.xlu0 %1117  ;;  %v3798_v20 = vld [vmem:[#allocation21_spill] sm:$0xff] }
 0x1b3   : > { %2432 = vpow2.f32 %v2181_v9  ;;  %vm1119_vm10 = vcmp.eq.s32.totalorder %v1118_v1, 1 }
 0x1b4   : > { %2434 = vpow2.f32 %v2182_v52 }
 0x1b5   : > { %2436 = vtanh.f32 %v1089_v41 }
 0x1b6   : > { %2438 = vpow2.f32 %v2183_v62 }
 0x1ba   : > { %v2431_v55 = vpop.eup %2430 }
 0x1bb   : > { %v994_v30 = vmul.f32 %v2431_v55, %v2429_v53 }
 0x1bd   : > { %v2433_v39 = vpop.eup %2432  ;;  %v3399_v61 = vsel %vm1000_vm9, %v994_v30, %v3178_v50  ;;  %v3794_v50 = vmov 0  }
 0x1be   : > { %v1099_v59 = vadd.f32 1.0, %v2433_v39  ;;  %v2435_v0 = vpop.eup %2434  ;;  %v1131_v8 = vpack.c.bf16 %v3399_v61, %v3399_v61 }
 0x1bf   : > { %v1100_v56 = vadd.f32 1.0, %v2435_v0  ;;  %v2437_v63 = vpop.eup %2436 }
 0x1c0   : > { %2440 = vrcp.f32 %v1099_v59  ;;  %1165 = vmatmul.mubr.bf16.vlgmr.msra.gmra.mrb[24].mxu0 %v1131_v8  ;;  %1206 = vmatmul.mubr.bf16.vlgmr.msra.gmra.mrb[24].mxu1 %v1131_v8  ;;  %v2439_v3 = vpop.eup %2438 }
 0x1c1   : > { %2442 = vrcp.f32 %v1100_v56  ;;  %1252 = vmatpush1.bf16.msra.mxu0 %v3063_v13  ;;  %1293 = vmatpush1.bf16.msra.mxu1 %v3065_v14  ;;  %v1101_v58 = vadd.f32 1.0, %v2439_v3 }
 0x1c2   : > { %1253 = vmatprep.subr.bf16.mxu0 %v3068_v15  ;;  %1294 = vmatprep.subr.bf16.mxu1 %v3071_v16 }
 0x1c3   : > { %1283 = vmatprep.mubr.bf16.mxu0 %v3794_v50  ;;  %1324 = vmatprep.mubr.bf16.mxu1 %v3794_v50  ;;  %2444 = vrcp.f32 %v1101_v58 }
 0x1c5   : > { %1254 = vmatpush1.bf16.msra.mxu0 %v3075_v17  ;;  %1295 = vmatpush1.bf16.msra.mxu1 %v3079_v18 }
 0x1c6   : > { %1255 = vmatprep.subr.bf16.mxu0 %v3083_v19  ;;  %1296 = vmatprep.subr.bf16.mxu1 %v3088_v21 }
 0x1c9   : > { %1256 = vmatpush1.bf16.msra.mxu0 %v3090_v22  ;;  %1297 = vmatpush1.bf16.msra.mxu1 %v3094_v23 }
 0x1ca   : > { %v2441_v54 = vpop.eup %2440  ;;  %1257 = vmatprep.subr.bf16.mxu0 %v3098_v24  ;;  %1298 = vmatprep.subr.bf16.mxu1 %v3100_v25 }
 0x1cb   : > { %v1110_v40 = vmul.f32 %v2441_v54, %v2437_v63  ;;  %v2443_v51 = vpop.eup %2442 }
 0x1cc   : > { %v1109_v60 = vmul.f32 %v2443_v51, %v715_v10 }
 0x1cd   : > { %1258 = vmatpush1.bf16.msra.mxu0 %v3104_v26  ;;  %1299 = vmatpush1.bf16.msra.mxu1 %v3108_v27  ;;  %v2445_v6 = vpop.eup %2444 }
 0x1ce   : > { %v1111_v2 = vadd.f32 %v1110_v40, %v1109_v60  ;;  %1259 = vmatprep.subr.bf16.mxu0 %v3112_v28  ;;  %1300 = vmatprep.subr.bf16.mxu1 %v3114_v29 }
 0x1d0   : > { %2446 = vtanh.f32 %v1111_v2  ;;  %v3422_v4 = vsel %vm1119_vm10, %v1111_v2, %v715_v10  ;;  %v1246_v10 = vpop.permute.xlu1 %1245 }
 0x1d1   : > { %1260 = vmatpush1.bf16.msra.mxu0 %v3119_v31  ;;  %1301 = vmatpush1.bf16.msra.mxu1 %v3121_v32  ;;  %vm1247_vm11 = vcmp.eq.s32.totalorder %v1246_v10, 1  ;;  %v3513_v10 = vld [vmem:[#allocation10 + $0x20] ss:$16 sps:$4 sm:$0xff]  }
 0x1d2   : > { %1261 = vmatprep.subr.bf16.mxu0 %v3125_v33  ;;  %1302 = vmatprep.subr.bf16.mxu1 %v3129_v34 }
 0x1d5   : > { %1262 = vmatpush1.bf16.msra.mxu0 %v3134_v35  ;;  %1303 = vmatpush1.bf16.msra.mxu1 %v3136_v36 }
 0x1d6   : > { %1263 = vmatprep.subr.bf16.mxu0 %v3140_v37  ;;  %1304 = vmatprep.subr.bf16.mxu1 %v3144_v38 }
 0x1d9   : > { %1264 = vmatpush1.bf16.msra.mxu0 %v3154_v42  ;;  %1305 = vmatpush1.bf16.msra.mxu1 %v3156_v43 }
 0x1da   : > { %v2447_v41 = vpop.eup %2446  ;;  %1265 = vmatprep.subr.bf16.mxu0 %v3162_v45  ;;  %1306 = vmatprep.subr.bf16.mxu1 %v3164_v46 }
 0x1db   : > { %v1113_v5 = vmul.f32 %v2447_v41, %v2445_v6  ;;  %v3799_v41 = vld [vmem:[#allocation22_spill] sm:$0xff] }
 0x1dd   : > { %v3438_v7 = vsel %vm1119_vm10, %v1113_v5, %v3227_v57  ;;  %1266 = vmatpush1.bf16.msra.mxu0 %v3174_v48  ;;  %1307 = vmatpush1.bf16.msra.mxu1 %v3176_v49  ;;  %v3797_v57 = vld [vmem:[#allocation20_spill] sm:$0xff] }
 0x1de   : > { %v1250_v9 = vpack.c.bf16 %v3438_v7, %v3438_v7  ;;  %1379 = vmatprep.subr.bf16.mxu0 %v3059_v11  ;;  %1420 = vmatprep.subr.bf16.mxu1 %v3061_v12 }
 0x1e0   : > { %1284 = vmatmul.mubr.bf16.vlgmr.msra.gmra.mrb[28].mxu0 %v1250_v9  ;;  %1325 = vmatmul.mubr.bf16.vlgmr.msra.gmra.mrb[28].mxu1 %v1250_v9  ;;  %v3800_v9 = vld [vmem:[#allocation23_spill] sm:$0xff] }
 0x1e1   : > { %1380 = vmatpush1.bf16.msra.mxu0 %v3063_v13  ;;  %1421 = vmatpush1.bf16.msra.mxu1 %v3065_v14 }
 0x1e2   : > { %1381 = vmatprep.subr.bf16.mxu0 %v3068_v15  ;;  %1422 = vmatprep.subr.bf16.mxu1 %v3071_v16  ;;  %v3795_v15 = vld [vmem:[#allocation18_spill] sm:$0xff] }
 0x1e3   : > { %1411 = vmatprep.mubr.bf16.mxu0 %v3794_v50  ;;  %1452 = vmatprep.mubr.bf16.mxu1 %v3794_v50 }
 0x1e5   : > { %1382 = vmatpush1.bf16.msra.mxu0 %v3075_v17  ;;  %1423 = vmatpush1.bf16.msra.mxu1 %v3079_v18  ;;  %v3796_v17 = vld [vmem:[#allocation19_spill] sm:$0xff] }
 0x1e6   : > { %1383 = vmatprep.subr.bf16.mxu0 %v3083_v19  ;;  %1424 = vmatprep.subr.bf16.mxu1 %v3088_v21 }
 0x1e9   : > { %1384 = vmatpush1.bf16.msra.mxu0 %v3090_v22  ;;  %1425 = vmatpush1.bf16.msra.mxu1 %v3094_v23 }
 0x1ea   : > { %1385 = vmatprep.subr.bf16.mxu0 %v3098_v24  ;;  %1426 = vmatprep.subr.bf16.mxu1 %v3100_v25 }
 0x1ed   : > { %1386 = vmatpush1.bf16.msra.mxu0 %v3104_v26  ;;  %1427 = vmatpush1.bf16.msra.mxu1 %v3108_v27 }
 0x1ee   : > { %1387 = vmatprep.subr.bf16.mxu0 %v3112_v28  ;;  %1428 = vmatprep.subr.bf16.mxu1 %v3114_v29 }
 0x1f1   : > { %1388 = vmatpush1.bf16.msra.mxu0 %v3119_v31  ;;  %1429 = vmatpush1.bf16.msra.mxu1 %v3121_v32 }
 0x1f2   : > { %1389 = vmatprep.subr.bf16.mxu0 %v3125_v33  ;;  %1430 = vmatprep.subr.bf16.mxu1 %v3129_v34 }
 0x1f5   : > { %1390 = vmatpush1.bf16.msra.mxu0 %v3134_v35  ;;  %1431 = vmatpush1.bf16.msra.mxu1 %v3136_v36 }
 0x1f6   : > { %1391 = vmatprep.subr.bf16.mxu0 %v3140_v37  ;;  %1432 = vmatprep.subr.bf16.mxu1 %v3144_v38 }
 0x1f9   : > { %1392 = vmatpush1.bf16.msra.mxu0 %v3154_v42  ;;  %1433 = vmatpush1.bf16.msra.mxu1 %v3156_v43 }
 0x1fa   : > { %1393 = vmatprep.subr.bf16.mxu0 %v3162_v45  ;;  %1434 = vmatprep.subr.bf16.mxu1 %v3164_v46 }
 0x1fd   : > { %1394 = vmatpush1.bf16.msra.mxu0 %v3174_v48  ;;  %1435 = vmatpush1.bf16.msra.mxu1 %v3176_v49 }
 0x1fe   : > { %1498 = vmatprep.subr.bf16.mxu0 %v3059_v11  ;;  %1539 = vmatprep.subr.bf16.mxu1 %v3061_v12 }
 0x293   : > { %v1166_v13 = vpop.f32.mrb[24].mxu0  ;;  %v1207_v14 = vpop.f32.mrb[24].mxu1 }
 0x294   : > { %v1214_v16 = vadd.f32 %v1166_v13, %v3795_v15  ;;  %v1216_v18 = vadd.f32 %v1207_v14, %v3796_v17  ;;  %v1168_v19 = vpop.f32.mrb[25].mxu0  ;;  %v1209_v22 = vpop.f32.mrb[25].mxu1 }
 0x295   : > { %v1215_v47 = vadd.f32 %v1168_v19, %v3797_v57  ;;  %v1217_v52 = vadd.f32 %v1209_v22, %v3798_v20  ;;  %v1170_v53 = vpop.f32.mrb[26].mxu0  ;;  %v1211_v55 = vpop.f32.mrb[26].mxu1 }
 0x296   : > { %v2184_v62 = vmul.f32 -1.442695, %v1214_v16  ;;  %v1171_v30 = vpop.f32.mrb[27].mxu0  ;;  %v1212_v39 = vpop.f32.mrb[27].mxu1  ;;  %v2186_v12 = vmul.f32 -1.442695, %v1216_v18 }
 0x297   : > { %v2185_v11 = vmul.f32 -1.442695, %v1215_v47  ;;  %v3801_v16 = vld [vmem:[#allocation24_spill] sm:$0xff]  ;;  %v3802_v18 = vld [vmem:[#allocation25_spill] sm:$0xff] }
 0x298   : > { %2448 = vpow2.f32 %v2184_v62 }
 0x299   : > { %2450 = vpow2.f32 %v2185_v11 }
 0x29a   : > { %2452 = vtanh.f32 %v1217_v52 }
 0x29b   : > { %2454 = vpow2.f32 %v2186_v12 }
 0x2a2   : > { %v2449_v59 = vpop.eup %2448 }
 0x2a3   : > { %v1227_v0 = vadd.f32 1.0, %v2449_v59  ;;  %v2451_v8 = vpop.eup %2450 }
 0x2a4   : > { %v1228_v56 = vadd.f32 1.0, %v2451_v8  ;;  %v2453_v63 = vpop.eup %2452 }
 0x2a5   : > { %2456 = vrcp.f32 %v1227_v0  ;;  %v2455_v3 = vpop.eup %2454 }
 0x2a6   : > { %2458 = vrcp.f32 %v1228_v56  ;;  %v1229_v58 = vadd.f32 1.0, %v2455_v3  ;;  %v3502_v3 = vld [vmem:[#allocation10 + $0x8] ss:$16 sps:$4 sm:$0xff]  }
 0x2a8   : > { %2460 = vrcp.f32 %v1229_v58 }
 0x2af   : > { %v2457_v54 = vpop.eup %2456 }
 0x2b0   : > { %v1238_v40 = vmul.f32 %v2457_v54, %v2453_v63  ;;  %v2459_v51 = vpop.eup %2458  ;;  %v3499_v63 = vld [vmem:[#allocation10] ss:$16 sps:$4 sm:$0xff]   ;;  %v3508_v54 = vld [vmem:[#allocation10 + $0x2c] ss:$16 sps:$4 sm:$0xff]  }
 0x2b1   : > { %v1237_v60 = vmul.f32 %v2459_v51, %v3395_v44  ;;  %v3519_v51 = vld [vmem:[#allocation10 + $0x44] ss:$16 sps:$4 sm:$0xff]  }
 0x2b2   : > { %v2461_v62 = vpop.eup %2460 }
 0x2b3   : > { %v1285_v1 = vpop.f32.mrb[28].mxu0  ;;  %v1326_v2 = vpop.f32.mrb[28].mxu1  ;;  %v1239_v6 = vadd.f32 %v1238_v40, %v1237_v60  ;;  %v3516_v40 = vld [vmem:[#allocation10 + $0x28] ss:$16 sps:$4 sm:$0xff]  }
 0x2b4   : > { %v1333_v5 = vadd.f32 %v1285_v1, %v3799_v41  ;;  %v1335_v13 = vadd.f32 %v1326_v2, %v3800_v9  ;;  %v1287_v14 = vpop.f32.mrb[29].mxu0  ;;  %v1328_v15 = vpop.f32.mrb[29].mxu1  ;;  %v3523_v2 = vld [vmem:[#allocation10 + $0x40] ss:$16 sps:$4 sm:$0xff]  }
 0x2b5   : > { %v1334_v17 = vadd.f32 %v1287_v14, %v3801_v16  ;;  %v1336_v19 = vadd.f32 %v1328_v15, %v3802_v18  ;;  %v1289_v22 = vpop.f32.mrb[30].mxu0  ;;  %v1330_v57 = vpop.f32.mrb[30].mxu1  ;;  %2462 = vtanh.f32 %v1239_v6  ;;  %v3491_v47 = vsel %vm1247_vm11, %v1239_v6, %v3395_v44  ;;  %v3595_v14 = vld [vmem:[#allocation10 + $0x88] ss:$16 sps:$4 sm:$0xff]   ;;  %v3598_v15 = vld [vmem:[#allocation10 + $0xa4] ss:$16 sps:$4 sm:$0xff]  }
 0x2b6   : > { %v2187_v20 = vmul.f32 -1.442695, %v1333_v5  ;;  %v1290_v52 = vpop.f32.mrb[31].mxu0  ;;  %v1331_v53 = vpop.f32.mrb[31].mxu1  ;;  %v2189_v39 = vmul.f32 -1.442695, %v1335_v13 }
 0x2b7   : > { %v2188_v55 = vmul.f32 -1.442695, %v1334_v17  ;;  %v3601_v16 = vld [vmem:[#allocation10 + $0xac] ss:$16 sps:$4 sm:$0xff]   ;;  %v3604_v17 = vld [vmem:[#allocation10 + $0xa0] ss:$16 sps:$4 sm:$0xff]  }
 0x2b8   : > { %2464 = vpow2.f32 %v2187_v20  ;;  %v3607_v18 = vld [vmem:[#allocation10 + $0xa8] ss:$16 sps:$4 sm:$0xff]   ;;  %v3613_v22 = vld [vmem:[#allocation10 + $0xcc] ss:$16 sps:$4 sm:$0xff]   ;;  %v3803_v52 = vld [vmem:[#allocation26_spill] sm:$0xff] }
 0x2b9   : > { %2466 = vpow2.f32 %v2188_v55  ;;  %v3804_v55 = vld [vmem:[#allocation27_spill] sm:$0xff] }
 0x2ba   : > { %2468 = vtanh.f32 %v1336_v19  ;;  %v3610_v19 = vld [vmem:[#allocation10 + $0xc4] ss:$16 sps:$4 sm:$0xff]  }
 0x2bb   : > { %2470 = vpow2.f32 %v2189_v39  ;;  %v3805_v39 = vld [vmem:[#allocation28_spill] sm:$0xff] }
 0x2bf   : > { %v2463_v30 = vpop.eup %2462 }
 0x2c0   : > { %v1241_v11 = vmul.f32 %v2463_v30, %v2461_v62 }
 0x2c2   : > { %v2465_v12 = vpop.eup %2464  ;;  %v3495_v59 = vsel %vm1247_vm11, %v1241_v11, %v3399_v61  ;;  %v3505_v61 = vld [vmem:[#allocation10 + $0x24] ss:$16 sps:$4 sm:$0xff]   ;;  %v3806_v11 = vld [vmem:[#allocation29_spill] sm:$0xff] }
 0x2c3   : > { %v1346_v0 = vadd.f32 1.0, %v2465_v12  ;;  %v2467_v8 = vpop.eup %2466  ;;  %v1378_v44 = vpack.c.bf16 %v3495_v59, %v3495_v59 }
 0x2c4   : > { %v1347_v56 = vadd.f32 1.0, %v2467_v8  ;;  %v2469_v58 = vpop.eup %2468 }
 0x2c5   : > { %2472 = vrcp.f32 %v1346_v0  ;;  %1412 = vmatmul.mubr.bf16.vlgmr.msra.gmra.mrb[32].mxu0 %v1378_v44  ;;  %1453 = vmatmul.mubr.bf16.vlgmr.msra.gmra.mrb[32].mxu1 %v1378_v44  ;;  %v2471_v60 = vpop.eup %2470 }
 0x2c6   : > { %2474 = vrcp.f32 %v1347_v56  ;;  %1499 = vmatpush1.bf16.msra.mxu0 %v3499_v63  ;;  %1540 = vmatpush1.bf16.msra.mxu1 %v3502_v3  ;;  %v1348_v5 = vadd.f32 1.0, %v2471_v60 }
 0x2c7   : > { %1500 = vmatprep.subr.bf16.mxu0 %v3505_v61  ;;  %1541 = vmatprep.subr.bf16.mxu1 %v3508_v54 }
 0x2c8   : > { %1530 = vmatprep.mubr.bf16.mxu0 %v3794_v50  ;;  %1571 = vmatprep.mubr.bf16.mxu1 %v3794_v50  ;;  %2476 = vrcp.f32 %v1348_v5 }
 0x2ca   : > { %1501 = vmatpush1.bf16.msra.mxu0 %v3513_v10  ;;  %1542 = vmatpush1.bf16.msra.mxu1 %v3516_v40 }
 0x2cb   : > { %1502 = vmatprep.subr.bf16.mxu0 %v3519_v51  ;;  %1543 = vmatprep.subr.bf16.mxu1 %v3088_v21  ;;  %v1365_v21 = vpop.permute.xlu1 %1364 }
 0x2cc   : > { %vm1366_vm12 = vcmp.eq.s32.totalorder %v1365_v21, 1 }
 0x2ce   : > { %1503 = vmatpush1.bf16.msra.mxu0 %v3523_v2  ;;  %1544 = vmatpush1.bf16.msra.mxu1 %v3094_v23 }
 0x2cf   : > { %v2473_v1 = vpop.eup %2472  ;;  %1504 = vmatprep.subr.bf16.mxu0 %v3098_v24  ;;  %1545 = vmatprep.subr.bf16.mxu1 %v3100_v25 }
 0x2d0   : > { %v1357_v6 = vmul.f32 %v2473_v1, %v2469_v58  ;;  %v2475_v41 = vpop.eup %2474 }
 0x2d1   : > { %v1356_v9 = vmul.f32 %v2475_v41, %v3422_v4 }
 0x2d2   : > { %1505 = vmatpush1.bf16.msra.mxu0 %v3104_v26  ;;  %1546 = vmatpush1.bf16.msra.mxu1 %v3108_v27  ;;  %v2477_v24 = vpop.eup %2476 }
 0x2d3   : > { %v1358_v13 = vadd.f32 %v1357_v6, %v1356_v9  ;;  %1506 = vmatprep.subr.bf16.mxu0 %v3112_v28  ;;  %1547 = vmatprep.subr.bf16.mxu1 %v3114_v29  ;;  %v2552_v29 = vld [vmem:[#allocation10 + $0x4] ss:$16 sps:$4 sm:$0xff]  }
 0x2d5   : > { %2478 = vtanh.f32 %v1358_v13  ;;  %v3536_v23 = vsel %vm1366_vm12, %v1358_v13, %v3422_v4  ;;  %v3589_v4 = vld [vmem:[#allocation10 + $0x8c] ss:$16 sps:$4 sm:$0xff]  }
 0x2d6   : > { %1507 = vmatpush1.bf16.msra.mxu0 %v3119_v31  ;;  %1548 = vmatpush1.bf16.msra.mxu1 %v3121_v32  ;;  %v2553_v31 = vld [vmem:[#allocation10 + $0xc] ss:$16 sps:$4 sm:$0xff]  }
 0x2d7   : > { %1508 = vmatprep.subr.bf16.mxu0 %v3125_v33  ;;  %1549 = vmatprep.subr.bf16.mxu1 %v3129_v34  ;;  %v3567_v32 = vld [vmem:[#allocation10 + $0x4c] ss:$16 sps:$4 sm:$0xff]   ;;  %v3571_v33 = vld [vmem:[#allocation10 + $0x48] ss:$16 sps:$4 sm:$0xff]   ;;  %v3574_v34 = vld [vmem:[#allocation10 + $0x64] ss:$16 sps:$4 sm:$0xff]  }
 0x2da   : > { %1509 = vmatpush1.bf16.msra.mxu0 %v3134_v35  ;;  %1550 = vmatpush1.bf16.msra.mxu1 %v3136_v36  ;;  %v3577_v35 = vld [vmem:[#allocation10 + $0x6c] ss:$16 sps:$4 sm:$0xff]   ;;  %v3580_v36 = vld [vmem:[#allocation10 + $0x60] ss:$16 sps:$4 sm:$0xff]  }
 0x2db   : > { %1510 = vmatprep.subr.bf16.mxu0 %v3140_v37  ;;  %1551 = vmatprep.subr.bf16.mxu1 %v3144_v38  ;;  %v3583_v37 = vld [vmem:[#allocation10 + $0x68] ss:$16 sps:$4 sm:$0xff]   ;;  %v3586_v38 = vld [vmem:[#allocation10 + $0x84] ss:$16 sps:$4 sm:$0xff]  }
 0x2de   : > { %1511 = vmatpush1.bf16.msra.mxu0 %v3154_v42  ;;  %1552 = vmatpush1.bf16.msra.mxu1 %v3156_v43 }
 0x2df   : > { %v2479_v25 = vpop.eup %2478  ;;  %1512 = vmatprep.subr.bf16.mxu0 %v3162_v45  ;;  %1553 = vmatprep.subr.bf16.mxu1 %v3164_v46 }
 0x2e0   : > { %v1360_v26 = vmul.f32 %v2479_v25, %v2477_v24  ;;  %v1493_v24 = vpop.permute.xlu0 %1492 }
 0x2e1   : > { %vm1494_vm13 = vcmp.eq.s32.totalorder %v1493_v24, 1  ;;  %v3814_v24 = vld [vmem:[#allocation37_spill] sm:$0xff] }
 0x2e2   : > { %v3552_v27 = vsel %vm1366_vm12, %v1360_v26, %v3438_v7  ;;  %1513 = vmatpush1.bf16.msra.mxu0 %v3174_v48  ;;  %1554 = vmatpush1.bf16.msra.mxu1 %v3176_v49  ;;  %v3592_v7 = vld [vmem:[#allocation10 + $0x80] ss:$16 sps:$4 sm:$0xff]  }
 0x2e3   : > { %v1497_v28 = vpack.c.bf16 %v3552_v27, %v3552_v27  ;;  %1626 = vmatprep.subr.bf16.mxu0 %v2552_v29  ;;  %1667 = vmatprep.subr.bf16.mxu1 %v2553_v31 }
 0x2e5   : > { %1531 = vmatmul.mubr.bf16.vlgmr.msra.gmra.mrb[36].mxu0 %v1497_v28  ;;  %1572 = vmatmul.mubr.bf16.vlgmr.msra.gmra.mrb[36].mxu1 %v1497_v28 }
 0x2e6   : > { %1627 = vmatpush1.bf16.msra.mxu0 %v3499_v63  ;;  %1668 = vmatpush1.bf16.msra.mxu1 %v3502_v3 }
 0x2e7   : > { %1628 = vmatprep.subr.bf16.mxu0 %v3505_v61  ;;  %1669 = vmatprep.subr.bf16.mxu1 %v3508_v54 }
 0x2e8   : > { %1658 = vmatprep.mubr.bf16.mxu0 %v3794_v50  ;;  %1699 = vmatprep.mubr.bf16.mxu1 %v3794_v50 }
 0x2ea   : > { %1629 = vmatpush1.bf16.msra.mxu0 %v3513_v10  ;;  %1670 = vmatpush1.bf16.msra.mxu1 %v3516_v40 }
 0x2eb   : > { %1630 = vmatprep.subr.bf16.mxu0 %v3519_v51  ;;  %1671 = vmatprep.subr.bf16.mxu1 %v3567_v32 }
 0x2ee   : > { %1631 = vmatpush1.bf16.msra.mxu0 %v3523_v2  ;;  %1672 = vmatpush1.bf16.msra.mxu1 %v3571_v33 }
 0x2ef   : > { %1632 = vmatprep.subr.bf16.mxu0 %v3574_v34  ;;  %1673 = vmatprep.subr.bf16.mxu1 %v3577_v35 }
 0x2f2   : > { %1633 = vmatpush1.bf16.msra.mxu0 %v3580_v36  ;;  %1674 = vmatpush1.bf16.msra.mxu1 %v3583_v37 }
 0x2f3   : > { %1634 = vmatprep.subr.bf16.mxu0 %v3586_v38  ;;  %1675 = vmatprep.subr.bf16.mxu1 %v3589_v4 }
 0x2f6   : > { %1635 = vmatpush1.bf16.msra.mxu0 %v3592_v7  ;;  %1676 = vmatpush1.bf16.msra.mxu1 %v3595_v14 }
 0x2f7   : > { %1636 = vmatprep.subr.bf16.mxu0 %v3598_v15  ;;  %1677 = vmatprep.subr.bf16.mxu1 %v3601_v16 }
 0x2fa   : > { %1637 = vmatpush1.bf16.msra.mxu0 %v3604_v17  ;;  %1678 = vmatpush1.bf16.msra.mxu1 %v3607_v18 }
 0x2fb   : > { %1638 = vmatprep.subr.bf16.mxu0 %v3610_v19  ;;  %1679 = vmatprep.subr.bf16.mxu1 %v3613_v22 }
 0x2fe   : > { %1639 = vmatpush1.bf16.msra.mxu0 %v3154_v42  ;;  %1680 = vmatpush1.bf16.msra.mxu1 %v3156_v43 }
 0x2ff   : > { %1640 = vmatprep.subr.bf16.mxu0 %v3162_v45  ;;  %1681 = vmatprep.subr.bf16.mxu1 %v3164_v46 }
 0x302   : > { %1641 = vmatpush1.bf16.msra.mxu0 %v3174_v48  ;;  %1682 = vmatpush1.bf16.msra.mxu1 %v3176_v49 }
 0x303   : > { %1745 = vmatprep.subr.bf16.mxu0 %v2552_v29  ;;  %1786 = vmatprep.subr.bf16.mxu1 %v2553_v31  ;;  %v3807_v31 = vld [vmem:[#allocation30_spill] sm:$0xff] }
 0x398   : > { %v1413_v57 = vpop.f32.mrb[32].mxu0  ;;  %v1454_v20 = vpop.f32.mrb[32].mxu1 }
 0x399   : > { %v1461_v53 = vadd.f32 %v1413_v57, %v3803_v52  ;;  %v1463_v62 = vadd.f32 %v1454_v20, %v3804_v55  ;;  %v1415_v30 = vpop.f32.mrb[33].mxu0  ;;  %v1456_v42 = vpop.f32.mrb[33].mxu1  ;;  %v3808_v20 = vld [vmem:[#allocation31_spill] sm:$0xff] }
 0x39a   : > { %v1462_v43 = vadd.f32 %v1415_v30, %v3805_v39  ;;  %v1464_v45 = vadd.f32 %v1456_v42, %v3806_v11  ;;  %v1417_v12 = vpop.f32.mrb[34].mxu0  ;;  %v1458_v46 = vpop.f32.mrb[34].mxu1  ;;  %v3810_v42 = vld [vmem:[#allocation33_spill] sm:$0xff] }
 0x39b   : > { %v2190_v0 = vmul.f32 -1.442695, %v1461_v53  ;;  %v1418_v48 = vpop.f32.mrb[35].mxu0  ;;  %v1459_v8 = vpop.f32.mrb[35].mxu1  ;;  %v2192_v44 = vmul.f32 -1.442695, %v1463_v62 }
 0x39c   : > { %v2191_v49 = vmul.f32 -1.442695, %v1462_v43  ;;  %v3809_v62 = vld [vmem:[#allocation32_spill] sm:$0xff] }
 0x39d   : > { %2480 = vpow2.f32 %v2190_v0 }
 0x39e   : > { %2482 = vpow2.f32 %v2191_v49 }
 0x39f   : > { %2484 = vtanh.f32 %v1464_v45 }
 0x3a0   : > { %2486 = vpow2.f32 %v2192_v44 }
 0x3a7   : > { %v2481_v56 = vpop.eup %2480 }
 0x3a8   : > { %v1474_v58 = vadd.f32 1.0, %v2481_v56  ;;  %v2483_v60 = vpop.eup %2482 }
 0x3a9   : > { %v1475_v1 = vadd.f32 1.0, %v2483_v60  ;;  %v2485_v6 = vpop.eup %2484 }
 0x3aa   : > { %2488 = vrcp.f32 %v1474_v58  ;;  %v2487_v41 = vpop.eup %2486 }
 0x3ab   : > { %2490 = vrcp.f32 %v1475_v1  ;;  %v1476_v13 = vadd.f32 1.0, %v2487_v41 }
 0x3ad   : > { %2492 = vrcp.f32 %v1476_v13 }
 0x3b4   : > { %v2489_v5 = vpop.eup %2488 }
 0x3b5   : > { %v1485_v9 = vmul.f32 %v2489_v5, %v2485_v6  ;;  %v2491_v21 = vpop.eup %2490 }
 0x3b6   : > { %v1484_v25 = vmul.f32 %v2491_v21, %v3491_v47  ;;  %v3813_v21 = vld [vmem:[#allocation36_spill] sm:$0xff] }
 0x3b7   : > { %v2493_v8 = vpop.eup %2492 }
 0x3b8   : > { %v1532_v26 = vpop.f32.mrb[36].mxu0  ;;  %v1573_v28 = vpop.f32.mrb[36].mxu1  ;;  %v1486_v29 = vadd.f32 %v1485_v9, %v1484_v25 }
 0x3b9   : > { %v1580_v57 = vadd.f32 %v1532_v26, %v3807_v31  ;;  %v1582_v52 = vadd.f32 %v1573_v28, %v3808_v20  ;;  %v1534_v53 = vpop.f32.mrb[37].mxu0  ;;  %v1575_v55 = vpop.f32.mrb[37].mxu1 }
 0x3ba   : > { %v1581_v30 = vadd.f32 %v1534_v53, %v3809_v62  ;;  %v1583_v39 = vadd.f32 %v1575_v55, %v3810_v42  ;;  %v1536_v43 = vpop.f32.mrb[38].mxu0  ;;  %v1577_v11 = vpop.f32.mrb[38].mxu1  ;;  %2494 = vtanh.f32 %v1486_v29  ;;  %v3633_v0 = vsel %vm1494_vm13, %v1486_v29, %v3491_v47 }
 0x3bb   : > { %v2193_v45 = vmul.f32 -1.442695, %v1580_v57  ;;  %v1537_v12 = vpop.f32.mrb[39].mxu0  ;;  %v1578_v46 = vpop.f32.mrb[39].mxu1  ;;  %v2195_v44 = vmul.f32 -1.442695, %v1582_v52 }
 0x3bc   : > { %v2194_v48 = vmul.f32 -1.442695, %v1581_v30  ;;  %v1740_v12 = vpop.permute.xlu0 %1739 }
 0x3bd   : > { %2496 = vpow2.f32 %v2193_v45  ;;  %vm1741_vm15 = vcmp.eq.s32.totalorder %v1740_v12, 1 }
 0x3be   : > { %2498 = vpow2.f32 %v2194_v48 }
 0x3bf   : > { %2500 = vtanh.f32 %v1583_v39 }
 0x3c0   : > { %2502 = vpow2.f32 %v2195_v44  ;;  %v3815_v44 = vld [vmem:[#allocation38_spill] sm:$0xff] }
 0x3c4   : > { %v2495_v49 = vpop.eup %2494 }
 0x3c5   : > { %v1488_v56 = vmul.f32 %v2495_v49, %v2493_v8 }
 0x3c7   : > { %v2497_v58 = vpop.eup %2496  ;;  %v3637_v1 = vsel %vm1494_vm13, %v1488_v56, %v3495_v59 }
 0x3c8   : > { %v1593_v60 = vadd.f32 1.0, %v2497_v58  ;;  %v2499_v6 = vpop.eup %2498  ;;  %v1625_v47 = vpack.c.bf16 %v3637_v1, %v3637_v1  ;;  %v3816_v58 = vld [vmem:[#allocation39_spill] sm:$0xff] }
 0x3c9   : > { %v1594_v41 = vadd.f32 1.0, %v2499_v6  ;;  %v2501_v59 = vpop.eup %2500 }
 0x3ca   : > { %2504 = vrcp.f32 %v1593_v60  ;;  %1659 = vmatmul.mubr.bf16.vlgmr.msra.gmra.mrb[40].mxu0 %v1625_v47  ;;  %1700 = vmatmul.mubr.bf16.vlgmr.msra.gmra.mrb[40].mxu1 %v1625_v47 }
 0x3cb   : > { %2506 = vrcp.f32 %v1594_v41  ;;  %1746 = vmatpush1.bf16.msra.mxu0 %v3499_v63  ;;  %1787 = vmatpush1.bf16.msra.mxu1 %v3502_v3  ;;  %v2503_v63 = vpop.eup %2502  ;;  %v3817_v41 = vld [vmem:[#allocation40_spill] sm:$0xff] }
 0x3cc   : > { %1747 = vmatprep.subr.bf16.mxu0 %v3505_v61  ;;  %1788 = vmatprep.subr.bf16.mxu1 %v3508_v54  ;;  %v1595_v61 = vadd.f32 1.0, %v2503_v63  ;;  %v3818_v63 = vld [vmem:[#allocation41_spill] sm:$0xff] }
 0x3cd   : > { %1777 = vmatprep.mubr.bf16.mxu0 %v3794_v50  ;;  %1818 = vmatprep.mubr.bf16.mxu1 %v3794_v50 }
 0x3ce   : > { %2508 = vrcp.f32 %v1595_v61 }
 0x3cf   : > { %1748 = vmatpush1.bf16.msra.mxu0 %v3513_v10  ;;  %1789 = vmatpush1.bf16.msra.mxu1 %v3516_v40  ;;  %v1612_v10 = vpop.permute.xlu1 %1611 }
 0x3d0   : > { %1749 = vmatprep.subr.bf16.mxu0 %v3519_v51  ;;  %1790 = vmatprep.subr.bf16.mxu1 %v3567_v32  ;;  %vm1613_vm14 = vcmp.eq.s32.totalorder %v1612_v10, 1  ;;  %v2570_v32 = vld [vmem:[#allocation10 + $0xc0] ss:$16 sps:$4 sm:$0xff]  }
 0x3d3   : > { %1750 = vmatpush1.bf16.msra.mxu0 %v3523_v2  ;;  %1791 = vmatpush1.bf16.msra.mxu1 %v3571_v33 }
 0x3d4   : > { %v2505_v5 = vpop.eup %2504  ;;  %1751 = vmatprep.subr.bf16.mxu0 %v3574_v34  ;;  %1792 = vmatprep.subr.bf16.mxu1 %v3577_v35  ;;  %v2572_v34 = vld [vmem:[#allocation10 + $0xe4] ss:$16 sps:$4 sm:$0xff]   ;;  %v2573_v35 = vld [vmem:[#allocation10 + $0xec] ss:$16 sps:$4 sm:$0xff]  }
 0x3d5   : > { %v1604_v3 = vmul.f32 %v2505_v5, %v2501_v59  ;;  %v2507_v50 = vpop.eup %2506 }
 0x3d6   : > { %v1603_v54 = vmul.f32 %v2507_v50, %v3536_v23 }
 0x3d7   : > { %1752 = vmatpush1.bf16.msra.mxu0 %v3580_v36  ;;  %1793 = vmatpush1.bf16.msra.mxu1 %v3583_v37  ;;  %v2574_v37 = vld [vmem:[#allocation10 + $0xe0] ss:$16 sps:$4 sm:$0xff]  }
 0x3d8   : > { %v1605_v40 = vadd.f32 %v1604_v3, %v1603_v54  ;;  %1753 = vmatprep.subr.bf16.mxu0 %v3586_v38  ;;  %1794 = vmatprep.subr.bf16.mxu1 %v3589_v4  ;;  %v2509_v2 = vpop.eup %2508  ;;  %v2575_v38 = vld [vmem:[#allocation10 + $0xe8] ss:$16 sps:$4 sm:$0xff]  }
 0x3da   : > { %2510 = vtanh.f32 %v1605_v40  ;;  %v3662_v51 = vsel %vm1613_vm14, %v1605_v40, %v3536_v23  ;;  %v2571_v23 = vld [vmem:[#allocation10 + $0xc8] ss:$16 sps:$4 sm:$0xff]  }
 0x3db   : > { %1754 = vmatpush1.bf16.msra.mxu0 %v3592_v7  ;;  %1795 = vmatpush1.bf16.msra.mxu1 %v3595_v14 }
 0x3dc   : > { %1755 = vmatprep.subr.bf16.mxu0 %v3598_v15  ;;  %1796 = vmatprep.subr.bf16.mxu1 %v3601_v16  ;;  %v3811_v16 = vld [vmem:[#allocation34_spill] sm:$0xff] }
 0x3df   : > { %1756 = vmatpush1.bf16.msra.mxu0 %v3604_v17  ;;  %1797 = vmatpush1.bf16.msra.mxu1 %v3607_v18  ;;  %v3812_v18 = vld [vmem:[#allocation35_spill] sm:$0xff] }
 0x3e0   : > { %1757 = vmatprep.subr.bf16.mxu0 %v3610_v19  ;;  %1798 = vmatprep.subr.bf16.mxu1 %v3613_v22 }
 0x3e3   : > { %1758 = vmatpush1.bf16.msra.mxu0 %v2570_v32  ;;  %1799 = vmatpush1.bf16.msra.mxu1 %v2571_v23 }
 0x3e4   : > { %v2511_v33 = vpop.eup %2510  ;;  %1759 = vmatprep.subr.bf16.mxu0 %v2572_v34  ;;  %1800 = vmatprep.subr.bf16.mxu1 %v2573_v35 }
 0x3e5   : > { %v1607_v36 = vmul.f32 %v2511_v33, %v2509_v2 }
 0x3e7   : > { %1760 = vmatpush1.bf16.msra.mxu0 %v2574_v37  ;;  %1801 = vmatpush1.bf16.msra.mxu1 %v2575_v38  ;;  %v3674_v4 = vsel %vm1613_vm14, %v1607_v36, %v3552_v27 }
 0x3e8   : > { %v1744_v7 = vpack.c.bf16 %v3674_v4, %v3674_v4 }
 0x3ea   : > { %1778 = vmatmul.mubr.bf16.vlgmr.msra.gmra.mrb[44].mxu0 %v1744_v7  ;;  %1819 = vmatmul.mubr.bf16.vlgmr.msra.gmra.mrb[44].mxu1 %v1744_v7 }
 0x49d   : > { %v1660_v14 = vpop.f32.mrb[40].mxu0  ;;  %v1701_v15 = vpop.f32.mrb[40].mxu1 }
 0x49e   : > { %v1708_v17 = vadd.f32 %v1660_v14, %v3811_v16  ;;  %v1710_v19 = vadd.f32 %v1701_v15, %v3812_v18  ;;  %v1662_v22 = vpop.f32.mrb[41].mxu0  ;;  %v1703_v9 = vpop.f32.mrb[41].mxu1 }
 0x49f   : > { %v1709_v13 = vadd.f32 %v1662_v22, %v3813_v21  ;;  %v1711_v25 = vadd.f32 %v1703_v9, %v3814_v24  ;;  %v1664_v26 = vpop.f32.mrb[42].mxu0  ;;  %v1705_v27 = vpop.f32.mrb[42].mxu1 }
 0x4a0   : > { %v2196_v28 = vmul.f32 -1.442695, %v1708_v17  ;;  %v1665_v29 = vpop.f32.mrb[43].mxu0  ;;  %v1706_v31 = vpop.f32.mrb[43].mxu1  ;;  %v2198_v20 = vmul.f32 -1.442695, %v1710_v19 }
 0x4a1   : > { %v2197_v57 = vmul.f32 -1.442695, %v1709_v13  ;;  %v1859_v19 = vpop.permute.xlu1 %1858  ;;  %v2576_v26 = vld [vmem:[#allocation11] sm:$0xff] (!%p2202_p4)   ;;  %v2798_v27 = vmov (!%p2202_p4), 0.0   ;;  %v2579_v29 = vld [vmem:[#allocation11 + $0x18] sm:$0xff] (!%p2202_p4)   ;;  %v2581_v31 = vld [vmem:[#allocation11 + $0x28] sm:$0xff] (!%p2202_p4)  }
 0x4a2   : > { %2512 = vpow2.f32 %v2196_v28  ;;  %vm1860_vm0 = vcmp.eq.s32.totalorder %v1859_v19, 1  ;;  %2227 = vmatprep.subr.bf16.mxu0 (!%p2202_p4), %v2798_v27  ;;  %v2577_v28 = vld [vmem:[#allocation11 + $0x8] sm:$0xff] (!%p2202_p4)   ;;  %2243 = vmatprep.mubr.msk.bf16.mxu0 (!%p2202_p4), %vm2799_vm1, %v2798_v27 }
 0x4a3   : > { %2514 = vpow2.f32 %v2197_v57  ;;  %2228 = vmatpush3.bf16.msra.mxu0 (!%p2202_p4), %v2576_v26  ;;  %v2582_v57 = vld [vmem:[#allocation11 + $0x30] sm:$0xff] (!%p2202_p4)  }
 0x4a4   : > { %2516 = vtanh.f32 %v1711_v25  ;;  %2229 = vmatprep.subr.bf16.mxu0 (!%p2202_p4), %v2798_v27 }
 0x4a5   : > { %2518 = vpow2.f32 %v2198_v20  ;;  %v2583_v20 = vld [vmem:[#allocation11 + $0x38] sm:$0xff] (!%p2202_p4)  }
 0x4a7   : > { %2230 = vmatpush3.bf16.msra.mxu0 (!%p2202_p4), %v2577_v28 }
 0x4a8   : > { %2231 = vmatprep.subr.bf16.mxu0 (!%p2202_p4), %v2798_v27 }
 0x4ac   : > { %v2513_v52 = vpop.eup %2512 }
 0x4ad   : > { %v1721_v53 = vadd.f32 1.0, %v2513_v52  ;;  %v2515_v55 = vpop.eup %2514 }
 0x4ae   : > { %v1722_v62 = vadd.f32 1.0, %v2515_v55  ;;  %v2517_v30 = vpop.eup %2516 }
 0x4af   : > { %2520 = vrcp.f32 %v1721_v53  ;;  %v2519_v42 = vpop.eup %2518 }
 0x4b0   : > { %2522 = vrcp.f32 %v1722_v62  ;;  %v1723_v45 = vadd.f32 1.0, %v2519_v42  ;;  %v2203_v62 = vld [vmem:[%s3750_s6] ss:$0 sm:$0xff] (!%p2202_p4) }
 0x4b2   : > { %2524 = vrcp.f32 %v1723_v45 }
 0x4b9   : > { %v2521_v39 = vpop.eup %2520 }
 0x4ba   : > { %v1732_v43 = vmul.f32 %v2521_v39, %v2517_v30  ;;  %v2523_v11 = vpop.eup %2522 }
 0x4bb   : > { %v1731_v46 = vmul.f32 %v2523_v11, %v3633_v0 }
 0x4bc   : > { %v2525_v32 = vpop.eup %2524 }
 0x4bd   : > { %v1779_v48 = vpop.f32.mrb[44].mxu0  ;;  %v1820_v8 = vpop.f32.mrb[44].mxu1  ;;  %v1733_v49 = vadd.f32 %v1732_v43, %v1731_v46 }
 0x4be   : > { %v1827_v56 = vadd.f32 %v1779_v48, %v3815_v44  ;;  %v1829_v60 = vadd.f32 %v1820_v8, %v3816_v58  ;;  %v1781_v6 = vpop.f32.mrb[45].mxu0  ;;  %v1822_v47 = vpop.f32.mrb[45].mxu1 }
 0x4bf   : > { %v1828_v59 = vadd.f32 %v1781_v6, %v3817_v41  ;;  %v1830_v5 = vadd.f32 %v1822_v47, %v3818_v63  ;;  %v1783_v3 = vpop.f32.mrb[46].mxu0  ;;  %v1824_v50 = vpop.f32.mrb[46].mxu1  ;;  %2526 = vtanh.f32 %v1733_v49  ;;  %v1743_v61 = vsel %vm1741_vm15, %v1733_v49, %v3633_v0 }
 0x4c0   : > { %v2199_v54 = vmul.f32 -1.442695, %v1827_v56  ;;  %v1784_v10 = vpop.f32.mrb[47].mxu0  ;;  %v1825_v40 = vpop.f32.mrb[47].mxu1  ;;  %1864 = vst [vmem:[#allocation3] sm:$0xff] %v1743_v61 }
 0x4c1   : > { %v2200_v2 = vmul.f32 -1.442695, %v1828_v59  ;;  %v2201_v33 = vmul.f32 -1.442695, %v1829_v60 }
 0x4c2   : > { %2528 = vpow2.f32 %v2199_v54 }
 0x4c3   : > { %2530 = vpow2.f32 %v2200_v2 }
 0x4c4   : > { %2532 = vtanh.f32 %v1830_v5 }
 0x4c5   : > { %2534 = vpow2.f32 %v2201_v33 }
 0x4c9   : > { %v2527_v23 = vpop.eup %2526 }
 0x4ca   : > { %v1735_v34 = vmul.f32 %v2527_v23, %v2525_v32 }
 0x4cc   : > { %v2529_v35 = vpop.eup %2528  ;;  %v1742_v36 = vsel %vm1741_vm15, %v1735_v34, %v3637_v1 }
 0x4cd   : > { %v1840_v37 = vadd.f32 1.0, %v2529_v35  ;;  %v2531_v38 = vpop.eup %2530  ;;  %1863 = vst [vmem:[#allocation2] sm:$0xff] %v1742_v36 }
 0x4ce   : > { %v1841_v0 = vadd.f32 1.0, %v2531_v38  ;;  %v2533_v7 = vpop.eup %2532 }
 0x4cf   : > { %2536 = vrcp.f32 %v1840_v37  ;;  %v2535_v14 = vpop.eup %2534 }
 0x4d0   : > { %2538 = vrcp.f32 %v1841_v0  ;;  %v1842_v18 = vadd.f32 1.0, %v2535_v14 }
 0x4d2   : > { %2540 = vrcp.f32 %v1842_v18 }
 0x4d4   : > { %v1871_v52 = vld [vmem:[#allocation2] sm:$0xff] (!%p2202_p4) }
 0x4d9   : > { %v2537_v15 = vpop.eup %2536 }
 0x4da   : > { %v1851_v16 = vmul.f32 %v2537_v15, %v2533_v7  ;;  %v2539_v17 = vpop.eup %2538 }
 0x4db   : > { %v1850_v22 = vmul.f32 %v2539_v17, %v3662_v51 }
 0x4dc   : > { %v2541_v21 = vpop.eup %2540 }
 0x4dd   : > { %v1852_v9 = vadd.f32 %v1851_v16, %v1850_v22 }
 0x4df   : > { %2542 = vtanh.f32 %v1852_v9  ;;  %v1862_v1 = vsel %vm1860_vm0, %v1852_v9, %v3662_v51  ;;  %v2578_v51 = vld [vmem:[#allocation11 + $0x10] sm:$0xff] (!%p2202_p4)  }
 0x4e0   : > { %1866 = vst [vmem:[#allocation3 + $0x8] sm:$0xff] %v1862_v1  ;;  %2232 = vmatpush3.bf16.msra.mxu0 (!%p2202_p4), %v2578_v51 }
 0x4e1   : > { %2233 = vmatprep.subr.bf16.mxu0 (!%p2202_p4), %v2798_v27 }
 0x4e4   : > { %2234 = vmatpush3.bf16.msra.mxu0 (!%p2202_p4), %v2579_v29 }
 0x4e5   : > { %2235 = vmatprep.subr.bf16.mxu0 (!%p2202_p4), %v2798_v27 }
 0x4e7   : > { %1870 = sbr.rel (%p2202_p4) target bundleno = 1493 (0x5d5), region = 72 }
 0x4e9   : > { %v2543_v13 = vpop.eup %2542 }
 0x4ea   : > { %v1854_v24 = vmul.f32 %v2543_v13, %v2541_v21 }
 0x4ec   : > { %v1861_v25 = vsel %vm1860_vm0, %v1854_v24, %v3674_v4  ;;  %v2580_v4 = vld [vmem:[#allocation11 + $0x20] sm:$0xff] (!%p2202_p4)  }
 0x4ed   : > { %1865 = vst [vmem:[#allocation2 + $0x8] sm:$0xff] %v1861_v25  ;;  %2236 = vmatpush3.bf16.msra.mxu0 (!%p2202_p4), %v2580_v4 }
 0x4ee   : > { %2237 = vmatprep.subr.bf16.mxu0 %v2798_v27 }
 0x4f1   : > { %2238 = vmatpush3.bf16.msra.mxu0 %v2581_v31 }
 0x4f2   : > { %2239 = vmatprep.subr.bf16.mxu0 %v2798_v27 }
 0x4f4   : > { %v1872_v53 = vld [vmem:[#allocation2 + $0x8] sm:$0xff] }
 0x4f5   : > { %2240 = vmatpush3.bf16.msra.mxu0 %v2582_v57  ;;  %v1873_v55 = vpack.c.bf16 %v1872_v53, %v1871_v52 }
 0x4f6   : > { %2241 = vmatprep.subr.bf16.mxu0 %v2798_v27 }
 0x4f9   : > { %2242 = vmatpush3.bf16.msra.mxu0 %v2583_v20 }
 0x4fc   : > { %2244 = vmatmul.mubr.bf16.vlgmr.msra.gmra.mrb[0].mxu0 %v1873_v55 }
 0x5cf   : > { %v1979_v30 = vpop.f32.mrb[0].mxu0 }
 0x5d0   : > { %v1980_v42 = vadd.f32 %v2203_v62, %v1979_v30  ;;  %v2245_v39 = vpop.f32.mrb[1].mxu0 }
 0x5d1   : > { %v1982_v43 = vpop.f32.mrb[2].mxu0 }
 0x5d2   : > { %1986 = vst [vmem:[#allocation13] sm:$0xff] %v1980_v42  ;;  %v1983_v11 = vadd.f32 %v2203_v62, %v1982_v43  ;;  %v2246_v45 = vpop.f32.mrb[3].mxu0 }
 0x5d4   : > { %1987 = vst [vmem:[#allocation13 + $0x8] sm:$0xff] %v1983_v11 }
 0x5d5 PF: > { %s3819_s18 = sadd.s32 4294967295, %s2786_s29   ;;  %s2800_s14 = smov [#allocation13]  }
 0x5d6   : > { %p3700_p5 = scmp.eq.s32.totalorder %s3819_s18, 1  ;;  %s1997_s13 = sshll.u32 %s2800_s14, 4  ;;  %s1998_s13 = int_to_ptr.vmem [resolvable:$true] %s1997_s13 }
 0x5d7   : > { %s2698_s20 = scalar_lea.vmem %s1998_s13, 256  ;;  %p2705_p0 = scmp.lt.s32.totalorder %s1998_s13, %s1998_s13 }
 0x5d8   : > { %p2699_p9 = scmp.ne.s32.totalorder %s1998_s13, %s2698_s20  ;;  %p2706_p2 = scmp.lt.s32.totalorder %s2698_s20, %s2698_s20 }
 0x5da   : > { %p2700_p12 = pnand %p2699_p9, %p3700_p5  ;;  %p2707_p6 = por %p2706_p2, %p2705_p0 }
 0x5dc   : > { %p2701_p13 = pneg %p2700_p12 }
 0x5de   : > { %p2708_p10 = pnand %p2707_p6, %p2701_p13 }
 0x5e0   : > { %2711 = shalt.err (!%p2708_p10)
}
 0x5e1   : > { %s3821_s22 = sld [smem:[#allocation42_spill]] }
 0x5e7   : > { %s2712_s17 = scalar_lea.hbm %s3821_s22, 256 }
 0x5e8   : > { %p2713_p1 = scmp.ne.s32.totalorder %s3821_s22, %s2712_s17  ;;  %p2718_p11 = scmp.lt.u32.totalorder %s2712_s17, %s3821_s22 }
 0x5ea   : > { %p2714_p3 = pnand %p2713_p1, %p3700_p5 }
 0x5ec   : > { %p2715_p8 = pneg %p2714_p3 }
 0x5ee   : > { %p2720_p7 = pnand %p2718_p11, %p2715_p8 }
 0x5f0   : > { %2723 = shalt.err (!%p2720_p7)
}
 0x5f1   : > { %s2801_s16 = smov 128   ;;  %s2802_s24 = smov 8  }
 0x5f2   : > { %2262 = dma.vmem_to_hbm [thread:$0]  (%p3700_p5), %s1998_s13, 256, %s3821_s22, [#allocation7], %s2801_s16, %s2801_s16, %s2802_s24  }
 0x5f3   : > { %2761 = dma.done.wait (%p3700_p5), [#allocation7], 256  }
 0x5f4   : > { %2763 = vsyncadd (%p3700_p5), [#allocation7], 4294967040 }
 0x5f5 PF: > { %s23_s29 = sadd.s32 1, %s2786_s29   ;;  %s3822_s24 = smov %s2770_s25 }
 0x5f6   : > { %p20_p4 = scmp.ge.s32.totalorder %s23_s29, 4   ;;  %s3823_s25 = smov %s2774_s26 }
 0x5f7   : > { %s3824_s26 = smov %s2992_s11  ;;  %s3825_s27 = smov %s2782_s28 }
 0x5f8   : > { %s3826_s28 = smov %s3828_s7  ;;  %22 = sbr.rel (!%p20_p4) target bundleno = 9 (0x9), region = 112 }
 0x5ff   :  { %2013 = vsyncpa [#allocation6], 1 }
 0x600   :  { %2015 = vsyncpa [#allocation6 + $0x1], 1 }
 0x601   :  { %2016 = vsyncpa [#allocation9], 1 }
 0x602   :  { %2017 = vsyncpa [#allocation12], 1 }
 0x603   :  { %2018 = vsyncpa [#allocation7], 1 }
 0x604   :  { %2020 = vsyncpa [#allocation7 + $0x1], 1 }

</bundles_post_ra>
